<compile_context>
chip_gen: v7x
topology: tpu7x:2x2x1
jax: 0.10.0
libtpu: 0.0.40
codegen_flags: <defaults>
</compile_context>

<pallas_src>
import jax
import jax.numpy as jnp
from jax import lax
from jax.experimental import pallas as pl
from jax.experimental.pallas import tpu as pltpu

EMB = 32                    # embedding_dim
HEADS = 4                   # num_heads
HEAD_DIM = EMB // HEADS
FFN = 64                    # fully_connected_dim
EPS = 1e-6                  # nn.LayerNorm(embedding_dim, 1e-06) -> eps
NEG = -1e9                  # additive mask value for "do not attend"

# rows of the packed bias / layernorm slab (each row padded to 4*EMB = 128 lanes)
_ROW_B1, _ROW_B2, _ROW_BF1, _ROW_BF2 = 0, 1, 2, 3
_ROW_G1, _ROW_BE1, _ROW_G2, _ROW_BE2, _ROW_G3, _ROW_BE3 = 4, 5, 6, 7, 8, 9
_VEC_ROWS = 10
_VEC_LANES = 4 * EMB        # 128


def _layer_norm(v, gamma, beta):
    mu = jnp.mean(v, axis=-1, keepdims=True)
    var = jnp.mean((v - mu) ** 2, axis=-1, keepdims=True)   # biased, like nn.LayerNorm
    return (v - mu) * lax.rsqrt(var + EPS) * gamma + beta


def _mha_block(q_rows, kv_rows, w, b_row, mask_fn, Bt, Lq, Lk, self_attn):
    """Multi-head attention: fused bf16 projections over Bt*L rows, per-batch scores.

    q_rows : (Bt*Lq, E) f32 query rows;  kv_rows : (Bt*Lk, E) f32 key/value rows.
    w      : (E, 4E) bf16 packed [Wq*scale | Wk | Wv | Wo]   ("x @ W" layout).
    b_row  : (1, 4E) f32 packed [bq*scale | bk | bv | bo].
    mask_fn(b) -> additive mask broadcastable to (H, Lq, Lk).
    Returns (out_rows (Bt*Lq, E) f32, attn_weights (Bt, H, Lq, Lk) f32).
    """
    E, H, HD = EMB, HEADS, HEAD_DIM
    # fused Q|K|V(|O-unused) projection, bf16 MXU operands, f32 accumulation
    projq = jnp.dot(q_rows.astype(jnp.bfloat16), w,
                    preferred_element_type=jnp.float32) + b_row       # (Bt*Lq, 4E)
    if self_attn:
        projk = projq
    else:
        projk = jnp.dot(kv_rows.astype(jnp.bfloat16), w,
                        preferred_element_type=jnp.float32) + b_row   # (Bt*Lk, 4E)
    wo = w[:, 3 * E:4 * E]                                            # (E, E) bf16
    bo = b_row[:, 3 * E:4 * E]                                        # (1, E) f32

    outs, aws = [], []
    for b in range(Bt):                      # static unroll over fused batch rows
        pq_t = projq[b * Lq:(b + 1) * Lq, :].T.astype(jnp.bfloat16)   # (4E, Lq)
        pk_t = (pq_t if self_attn
                else projk[b * Lk:(b + 1) * Lk, :].T.astype(jnp.bfloat16))  # (4E, Lk)
        # heads live along sublanes -> safe leading-dim-only reshapes
        q_t = pq_t[0:E].reshape(H, HD, Lq)
        k_t = pk_t[E:2 * E].reshape(H, HD, Lk)
        v_t = pk_t[2 * E:3 * E].reshape(H, HD, Lk)
        # scores[h, l, s] = sum_d q[h, d, l] * k[h, d, s]  (scale folded into Wq)
        s = jnp.einsum('hdl,hds->hls', q_t, k_t,
                       preferred_element_type=jnp.float32)            # (H, Lq, Lk)
        s = s + mask_fn(b)
        m = jnp.max(s, axis=-1, keepdims=True)
        e = jnp.exp(s - m)
        probs = e * pl.reciprocal(jnp.sum(e, axis=-1, keepdims=True), approx=True)
        aws.append(probs)
        # ctx_t[h, d, l] = sum_s v[h, d, s] * probs[h, l, s]
        ctx_t = jnp.einsum('hds,hls->hdl', v_t, probs.astype(jnp.bfloat16),
                           preferred_element_type=jnp.float32)        # (H, HD, Lq)
        # fused output projection: concat_h(ctx_h) @ Wo as ONE dot_general
        o_b = lax.dot_general(ctx_t.reshape(E, Lq).astype(jnp.bfloat16), wo,
                              (((0,), (0,)), ((), ())),
                              preferred_element_type=jnp.float32)     # (Lq, E)
        outs.append(o_b + bo)
    return jnp.concatenate(outs, axis=0), jnp.stack(aws, axis=0)


def decoder_layer_kernel(x_ref, enc_ref, la_ref, pad_ref,
                         w1_ref, w2_ref, wf1_ref, wf2_ref, vec_ref,
                         out_ref, aw1_ref, aw2_ref):
    Bt, L, E = x_ref.shape
    S = enc_ref.shape[1]

    vec = vec_ref[...]                               # (10, 128) bias / LN slab (f32)

    def vrow(r, n):
        return vec[r:r + 1, 0:n]                     # (1, n)

    x = x_ref[...].reshape(Bt * L, E)                # flatten batch tile -> MXU M dim
    enc = enc_ref[...].reshape(Bt * S, E)
    la = la_ref[...]                                 # (L, L) additive look-ahead mask
    pad = pad_ref[...]                               # (Bt, S) additive padding mask

    # ---- block 1: masked self-attention + residual + layernorm1 ----
    attn1, aw1 = _mha_block(x, x, w1_ref[...], vec[_ROW_B1:_ROW_B1 + 1, :],
                            lambda b: la[None, :, :], Bt, L, L, self_attn=True)
    aw1_ref[...] = aw1.astype(aw1_ref.dtype)         # single store, all heads/batches
    q1 = _layer_norm(x + attn1, vrow(_ROW_G1, EMB), vrow(_ROW_BE1, EMB))

    # ---- block 2: cross-attention vs enc_output + residual + layernorm2 ----
    def cross_mask(b):
        return pad[b:b + 1, :][None, :, :]           # (1, 1, S) -> broadcast to (H, L, S)

    attn2, aw2 = _mha_block(q1, enc, w2_ref[...], vec[_ROW_B2:_ROW_B2 + 1, :],
                            cross_mask, Bt, L, S, self_attn=False)
    aw2_ref[...] = aw2.astype(aw2_ref.dtype)
    y2 = _layer_norm(attn2 + q1, vrow(_ROW_G2, EMB), vrow(_ROW_BE2, EMB))

    # ---- block 3: FFN + residual + layernorm3 ----
    # TODO(synk): nn.Dropout / attention dropout are identity (eval mode); no RNG.
    h = jnp.maximum(jnp.dot(y2.astype(jnp.bfloat16), wf1_ref[...],
                            preferred_element_type=jnp.float32)
                    + vrow(_ROW_BF1, FFN), 0.0)
    ffn = jnp.dot(h.astype(jnp.bfloat16), wf2_ref[...],
                  preferred_element_type=jnp.float32) + vrow(_ROW_BF2, EMB)
    out = _layer_norm(ffn + y2, vrow(_ROW_G3, EMB), vrow(_ROW_BE3, EMB))
    out_ref[...] = out.reshape(Bt, L, E).astype(out_ref.dtype)


def _pick_grid(B, L):
    """Grid steps. Fuse the whole batch into ONE step (no serialization on
    single-TC v5e/v6e, no duplicated prologue/param DMA on v7x) unless the
    fused row count exceeds one MXU pass worth of rows."""
    if B * L <= 256:
        return 1
    for g in range(2, B + 1):
        if B % g == 0 and (B // g) * L <= 256:
            return g
    return B


def decoder_layer(x, enc_output, look_ahead_add, padding_add, packed_params):
    """x:(B,L,E)  enc_output:(B,S,E)  look_ahead_add:(L,L)  padding_add:(B,S)."""
    w1, w2, wf1, wf2, vec = packed_params
    B, L, E = x.shape
    _, S, _ = enc_output.shape
    H = HEADS
    G = _pick_grid(B, L)
    Bt = B // G

    def fixed(arr):
        nd = arr.ndim
        return pl.BlockSpec(arr.shape, lambda g, nd=nd: (0,) * nd)

    in_specs = [
        pl.BlockSpec((Bt, L, E), lambda g: (g, 0, 0)),     # x
        pl.BlockSpec((Bt, S, E), lambda g: (g, 0, 0)),     # enc_output
        fixed(look_ahead_add),                             # (L, L) additive mask
        pl.BlockSpec((Bt, S), lambda g: (g, 0)),           # (Bt, S) additive padding mask
        fixed(w1), fixed(w2), fixed(wf1), fixed(wf2), fixed(vec),
    ]
    out_shape = (
        jax.ShapeDtypeStruct((B, L, E), jnp.float32),
        jax.ShapeDtypeStruct((B, H, L, L), jnp.float32),
        jax.ShapeDtypeStruct((B, H, L, S), jnp.float32),
    )
    out_specs = (
        pl.BlockSpec((Bt, L, E), lambda g: (g, 0, 0)),
        pl.BlockSpec((Bt, H, L, L), lambda g: (g, 0, 0, 0)),
        pl.BlockSpec((Bt, H, L, S), lambda g: (g, 0, 0, 0)),
    )
    sem = ("parallel",) if G > 1 else ("arbitrary",)

    return pl.pallas_call(
        decoder_layer_kernel,
        out_shape=out_shape,
        grid=(G,),
        in_specs=in_specs,
        out_specs=out_specs,
        compiler_params=pltpu.CompilerParams(dimension_semantics=sem),
    )(x, enc_output, look_ahead_add, padding_add, w1, w2, wf1, wf2, vec)


# ----------------------------- parameters ---------------------------------

def init_params(key):
    """Deterministic synthetic parameters (raw, PyTorch-equivalent layout, f32)."""
    ks = jax.random.split(key, 26)
    lin = lambda k, din, dout: jax.random.normal(k, (din, dout), jnp.float32) * 0.05
    vecr = lambda k, d: jax.random.normal(k, (d,), jnp.float32) * 0.02
    p = {}
    for i, n in enumerate(['wq1', 'wk1', 'wv1', 'wo1', 'wq2', 'wk2', 'wv2', 'wo2']):
        p[n] = lin(ks[i], EMB, EMB)
    for i, n in enumerate(['bq1', 'bk1', 'bv1', 'bo1', 'bq2', 'bk2', 'bv2', 'bo2']):
        p[n] = vecr(ks[8 + i], EMB)
    p['wf1'] = lin(ks[16], EMB, FFN); p['bf1'] = vecr(ks[17], FFN)
    p['wf2'] = lin(ks[18], FFN, EMB); p['bf2'] = vecr(ks[19], EMB)
    p['g1'] = 1.0 + vecr(ks[20], EMB); p['be1'] = vecr(ks[21], EMB)
    p['g2'] = 1.0 + vecr(ks[22], EMB); p['be2'] = vecr(ks[23], EMB)
    p['g3'] = 1.0 + vecr(ks[24], EMB); p['be3'] = vecr(ks[25], EMB)
    return p


def pack_params(p):
    """Pack into lane-dense slabs; fold 1/sqrt(head_dim) into Wq / bq.
    Weights are stored bf16 (MXU-native, half the DMA bytes); biases / LN in f32."""
    scale = 1.0 / (HEAD_DIM ** 0.5)
    w1 = jnp.concatenate([p['wq1'] * scale, p['wk1'], p['wv1'], p['wo1']],
                         axis=1).astype(jnp.bfloat16)                 # (E, 4E)
    w2 = jnp.concatenate([p['wq2'] * scale, p['wk2'], p['wv2'], p['wo2']],
                         axis=1).astype(jnp.bfloat16)
    wf1 = p['wf1'].astype(jnp.bfloat16)
    wf2 = p['wf2'].astype(jnp.bfloat16)
    vec = jnp.zeros((_VEC_ROWS, _VEC_LANES), jnp.float32)

    def put(v, r, val):
        return v.at[r, :val.shape[0]].set(val)

    vec = put(vec, _ROW_B1, jnp.concatenate([p['bq1'] * scale, p['bk1'], p['bv1'], p['bo1']]))
    vec = put(vec, _ROW_B2, jnp.concatenate([p['bq2'] * scale, p['bk2'], p['bv2'], p['bo2']]))
    vec = put(vec, _ROW_BF1, p['bf1'])
    vec = put(vec, _ROW_BF2, p['bf2'])
    vec = put(vec, _ROW_G1, p['g1']); vec = put(vec, _ROW_BE1, p['be1'])
    vec = put(vec, _ROW_G2, p['g2']); vec = put(vec, _ROW_BE2, p['be2'])
    vec = put(vec, _ROW_G3, p['g3']); vec = put(vec, _ROW_BE3, p['be3'])
    return (w1, w2, wf1, wf2, vec)


# ------------------------ pure-JAX reference (for checking) ----------------

def decoder_layer_ref(x, enc, look_ahead_add, padding_add, p):
    def ln(v, g, b):
        mu = v.mean(-1, keepdims=True)
        var = ((v - mu) ** 2).mean(-1, keepdims=True)
        return (v - mu) / jnp.sqrt(var + EPS) * g + b

    def mha(q_in, kv_in, pre, mask):
        B, Lq, E = q_in.shape
        Lk = kv_in.shape[1]
        q = q_in @ p['wq' + pre] + p['bq' + pre]
        k = kv_in @ p['wk' + pre] + p['bk' + pre]
        v = kv_in @ p['wv' + pre] + p['bv' + pre]
        q = q.reshape(B, Lq, HEADS, HEAD_DIM).transpose(0, 2, 1, 3)
        k = k.reshape(B, Lk, HEADS, HEAD_DIM).transpose(0, 2, 1, 3)
        v = v.reshape(B, Lk, HEADS, HEAD_DIM).transpose(0, 2, 1, 3)
        s = q @ jnp.swapaxes(k, -1, -2) / (HEAD_DIM ** 0.5) + mask
        w = jax.nn.softmax(s, axis=-1)
        ctx = (w @ v).transpose(0, 2, 1, 3).reshape(B, Lq, E)
        return ctx @ p['wo' + pre] + p['bo' + pre], w

    a1, w1 = mha(x, x, '1', look_ahead_add[None, None, :, :])
    q1 = ln(x + a1, p['g1'], p['be1'])
    a2, w2 = mha(q1, enc, '2', padding_add[:, None, None, :])
    y2 = ln(a2 + q1, p['g2'], p['be2'])
    h = jnp.maximum(y2 @ p['wf1'] + p['bf1'], 0.0)
    ffn = h @ p['wf2'] + p['bf2']
    return ln(ffn + y2, p['g3'], p['be3']), w1, w2


if __name__ == "__main__":
    key = jax.random.PRNGKey(0)
    k_x, k_enc, k_p = jax.random.split(key, 3)

    B, L, S = 2, 8, 8
    x = jax.random.normal(k_x, (B, L, EMB), jnp.float32)
    enc_output = jax.random.normal(k_enc, (B, S, EMB), jnp.float32)

    # causal look-ahead mask (additive): position i may not attend to j > i
    causal = jnp.triu(jnp.ones((L, L), jnp.bool_), k=1)
    look_ahead_add = jnp.where(causal, NEG, 0.0).astype(jnp.float32)
    # key_padding_mask: True = padded key (batch 1 has its last 2 keys padded)
    pad_bool = jnp.zeros((B, S), jnp.bool_).at[1, -2:].set(True)
    padding_add = jnp.where(pad_bool, NEG, 0.0).astype(jnp.float32)

    raw = init_params(k_p)
    packed = pack_params(raw)

    out3, aw1, aw2 = decoder_layer(x, enc_output, look_ahead_add, padding_add, packed)
    jax.block_until_ready((out3, aw1, aw2))

    assert out3.shape == (B, L, EMB)
    assert aw1.shape == (B, HEADS, L, L)
    assert aw2.shape == (B, HEADS, L, S)

    r3, rw1, rw2 = decoder_layer_ref(x, enc_output, look_ahead_add, padding_add, raw)
    # bf16 MXU operands with f32 accumulation vs the f32 reference
    assert jnp.allclose(out3, r3, atol=1e-2, rtol=1e-2), \
        f"out3 max err {float(jnp.max(jnp.abs(out3 - r3)))}"
    assert jnp.allclose(aw1, rw1, atol=5e-3, rtol=5e-3), \
        f"aw1 max err {float(jnp.max(jnp.abs(aw1 - rw1)))}"
    assert jnp.allclose(aw2, rw2, atol=5e-3, rtol=5e-3), \
        f"aw2 max err {float(jnp.max(jnp.abs(aw2 - rw2)))}"

    print("KERNEL_OK")
</pallas_src>

<mosaic_0001>
module attributes {stable_mosaic.version = 11 : i64} {
  func.func @decoder_layer_kernel(%arg0: i32, %arg1: memref<2x8x32xf32, #tpu.memory_space<vmem>>, %arg2: memref<2x8x32xf32, #tpu.memory_space<vmem>>, %arg3: memref<8x8xf32, #tpu.memory_space<vmem>>, %arg4: memref<2x8xf32, #tpu.memory_space<vmem>>, %arg5: memref<32x128xbf16, #tpu.memory_space<vmem>>, %arg6: memref<32x128xbf16, #tpu.memory_space<vmem>>, %arg7: memref<32x64xbf16, #tpu.memory_space<vmem>>, %arg8: memref<64x32xbf16, #tpu.memory_space<vmem>>, %arg9: memref<10x128xf32, #tpu.memory_space<vmem>>, %arg10: memref<2x8x32xf32, #tpu.memory_space<vmem>>, %arg11: memref<2x4x8x8xf32, #tpu.memory_space<vmem>>, %arg12: memref<2x4x8x8xf32, #tpu.memory_space<vmem>>) attributes {dimension_semantics = [#tpu.dimension_semantics<arbitrary>], iteration_bounds = array<i64: 1>, scalar_prefetch = 0 : i64, scratch_operands = 0 : i64, tpu.core_type = #tpu.core_type<tc>, window_params = [{transform_indices = @transform_0, window_bounds = array<i64: 2, 8, 32>}, {transform_indices = @transform_1, window_bounds = array<i64: 2, 8, 32>}, {pipeline_mode = #tpu.pipeline_mode<synchronous>, transform_indices = @transform_2, window_bounds = array<i64: 8, 8>}, {transform_indices = @transform_3, window_bounds = array<i64: 2, 8>}, {pipeline_mode = #tpu.pipeline_mode<synchronous>, transform_indices = @transform_4, window_bounds = array<i64: 32, 128>}, {pipeline_mode = #tpu.pipeline_mode<synchronous>, transform_indices = @transform_5, window_bounds = array<i64: 32, 128>}, {pipeline_mode = #tpu.pipeline_mode<synchronous>, transform_indices = @transform_6, window_bounds = array<i64: 32, 64>}, {pipeline_mode = #tpu.pipeline_mode<synchronous>, transform_indices = @transform_7, window_bounds = array<i64: 64, 32>}, {pipeline_mode = #tpu.pipeline_mode<synchronous>, transform_indices = @transform_8, window_bounds = array<i64: 10, 128>}, {transform_indices = @transform_9, window_bounds = array<i64: 2, 8, 32>}, {transform_indices = @transform_10, window_bounds = array<i64: 2, 4, 8, 8>}, {transform_indices = @transform_11, window_bounds = array<i64: 2, 4, 8, 8>}]} {
    %c0 = arith.constant 0 : index
    %c0_0 = arith.constant 0 : index
    %0 = vector.load %arg9[%c0, %c0_0] : memref<10x128xf32, #tpu.memory_space<vmem>>, vector<10x128xf32>
    %c0_1 = arith.constant 0 : index
    %c0_2 = arith.constant 0 : index
    %c0_3 = arith.constant 0 : index
    %1 = vector.load %arg1[%c0_1, %c0_2, %c0_3] : memref<2x8x32xf32, #tpu.memory_space<vmem>>, vector<2x8x32xf32>
    %2 = vector.shape_cast %1 : vector<2x8x32xf32> to vector<16x32xf32>
    %c0_4 = arith.constant 0 : index
    %c0_5 = arith.constant 0 : index
    %c0_6 = arith.constant 0 : index
    %3 = vector.load %arg2[%c0_4, %c0_5, %c0_6] : memref<2x8x32xf32, #tpu.memory_space<vmem>>, vector<2x8x32xf32>
    %4 = vector.shape_cast %3 : vector<2x8x32xf32> to vector<16x32xf32>
    %c0_7 = arith.constant 0 : index
    %c0_8 = arith.constant 0 : index
    %5 = vector.load %arg3[%c0_7, %c0_8] : memref<8x8xf32, #tpu.memory_space<vmem>>, vector<8x8xf32>
    %c0_9 = arith.constant 0 : index
    %c0_10 = arith.constant 0 : index
    %6 = vector.load %arg4[%c0_9, %c0_10] : memref<2x8xf32, #tpu.memory_space<vmem>>, vector<2x8xf32>
    %c0_11 = arith.constant 0 : index
    %c0_12 = arith.constant 0 : index
    %7 = vector.load %arg5[%c0_11, %c0_12] : memref<32x128xbf16, #tpu.memory_space<vmem>>, vector<32x128xbf16>
    %8 = vector.extract_strided_slice %0 {offsets = [0, 0], sizes = [1, 128], strides = [1, 1]} : vector<10x128xf32> to vector<1x128xf32>
    %9 = arith.truncf %2 : vector<16x32xf32> to vector<16x32xbf16>
    %cst = arith.constant dense<0.000000e+00> : vector<16x128xf32>
    %10 = tpu.matmul %9, %7, %cst {dimension_numbers = #tpu.dot_dimension_numbers<[1], [0], [0], [1], [0, 0, 1, 1], [], []>} : vector<16x32xbf16>, vector<32x128xbf16>, vector<16x128xf32> -> vector<16x128xf32>
    %11 = vector.broadcast %8 : vector<1x128xf32> to vector<16x128xf32>
    %12 = arith.addf %10, %11 : vector<16x128xf32>
    %13 = vector.extract_strided_slice %7 {offsets = [0, 96], sizes = [32, 32], strides = [1, 1]} : vector<32x128xbf16> to vector<32x32xbf16>
    %14 = vector.extract_strided_slice %8 {offsets = [0, 96], sizes = [1, 32], strides = [1, 1]} : vector<1x128xf32> to vector<1x32xf32>
    %15 = vector.extract_strided_slice %12 {offsets = [0, 0], sizes = [8, 128], strides = [1, 1]} : vector<16x128xf32> to vector<8x128xf32>
    %16 = tpu.transpose %15, [1, 0] : vector<8x128xf32> -> vector<128x8xf32>
    %17 = arith.truncf %16 : vector<128x8xf32> to vector<128x8xbf16>
    %18 = vector.extract_strided_slice %17 {offsets = [0, 0], sizes = [32, 8], strides = [1, 1]} : vector<128x8xbf16> to vector<32x8xbf16>
    %19 = vector.shape_cast %18 : vector<32x8xbf16> to vector<4x8x8xbf16>
    %20 = vector.extract_strided_slice %17 {offsets = [32, 0], sizes = [32, 8], strides = [1, 1]} : vector<128x8xbf16> to vector<32x8xbf16>
    %21 = vector.shape_cast %20 : vector<32x8xbf16> to vector<4x8x8xbf16>
    %22 = vector.extract_strided_slice %17 {offsets = [64, 0], sizes = [32, 8], strides = [1, 1]} : vector<128x8xbf16> to vector<32x8xbf16>
    %23 = vector.shape_cast %22 : vector<32x8xbf16> to vector<4x8x8xbf16>
    "tpu.trace_start"() <{level = 10 : i32, message = "hdl,hds->hls"}> : () -> ()
    %cst_13 = arith.constant dense<0.000000e+00> : vector<4x8x8xf32>
    %24 = tpu.matmul %19, %21, %cst_13 {dimension_numbers = #tpu.dot_dimension_numbers<[1], [1], [2], [2], [0, 0, 0, 2, 1, 2], [0], [0]>} : vector<4x8x8xbf16>, vector<4x8x8xbf16>, vector<4x8x8xf32> -> vector<4x8x8xf32>
    "tpu.trace_stop"() : () -> ()
    %25 = vector.shape_cast %5 : vector<8x8xf32> to vector<1x8x8xf32>
    %26 = vector.broadcast %25 : vector<1x8x8xf32> to vector<4x8x8xf32>
    %27 = arith.addf %24, %26 : vector<4x8x8xf32>
    %cst_14 = arith.constant dense<0xFF800000> : vector<4x8xf32>
    %28 = vector.multi_reduction <maximumf>, %27, %cst_14 [2] : vector<4x8x8xf32> to vector<4x8xf32>
    %29 = vector.shape_cast %28 : vector<4x8xf32> to vector<4x8x1xf32>
    %30 = vector.broadcast %29 : vector<4x8x1xf32> to vector<4x8x8xf32>
    %31 = arith.subf %27, %30 : vector<4x8x8xf32>
    %32 = math.exp %31 : vector<4x8x8xf32>
    %cst_15 = arith.constant dense<0.000000e+00> : vector<4x8xf32>
    %33 = vector.multi_reduction <add>, %32, %cst_15 [2] : vector<4x8x8xf32> to vector<4x8xf32>
    %34 = vector.shape_cast %33 : vector<4x8xf32> to vector<4x8x1xf32>
    %35 = tpu.reciprocal %34 {approx = true} : vector<4x8x1xf32> -> vector<4x8x1xf32>
    %36 = vector.broadcast %35 : vector<4x8x1xf32> to vector<4x8x8xf32>
    %37 = arith.mulf %32, %36 : vector<4x8x8xf32>
    %38 = arith.truncf %37 : vector<4x8x8xf32> to vector<4x8x8xbf16>
    "tpu.trace_start"() <{level = 10 : i32, message = "hds,hls->hdl"}> : () -> ()
    %cst_16 = arith.constant dense<0.000000e+00> : vector<4x8x8xf32>
    %39 = tpu.matmul %23, %38, %cst_16 {dimension_numbers = #tpu.dot_dimension_numbers<[2], [2], [1], [1], [0, 0, 0, 1, 1, 1], [0], [0]>} : vector<4x8x8xbf16>, vector<4x8x8xbf16>, vector<4x8x8xf32> -> vector<4x8x8xf32>
    "tpu.trace_stop"() : () -> ()
    %40 = vector.shape_cast %39 : vector<4x8x8xf32> to vector<32x8xf32>
    %41 = arith.truncf %40 : vector<32x8xf32> to vector<32x8xbf16>
    %cst_17 = arith.constant dense<0.000000e+00> : vector<8x32xf32>
    %42 = tpu.matmul %41, %13, %cst_17 {dimension_numbers = #tpu.dot_dimension_numbers<[0], [0], [1], [1], [0, 1, 1, 1], [], []>} : vector<32x8xbf16>, vector<32x32xbf16>, vector<8x32xf32> -> vector<8x32xf32>
    %43 = vector.broadcast %14 : vector<1x32xf32> to vector<8x32xf32>
    %44 = arith.addf %42, %43 : vector<8x32xf32>
    %45 = vector.extract_strided_slice %12 {offsets = [8, 0], sizes = [8, 128], strides = [1, 1]} : vector<16x128xf32> to vector<8x128xf32>
    %46 = tpu.transpose %45, [1, 0] : vector<8x128xf32> -> vector<128x8xf32>
    %47 = arith.truncf %46 : vector<128x8xf32> to vector<128x8xbf16>
    %48 = vector.extract_strided_slice %47 {offsets = [0, 0], sizes = [32, 8], strides = [1, 1]} : vector<128x8xbf16> to vector<32x8xbf16>
    %49 = vector.shape_cast %48 : vector<32x8xbf16> to vector<4x8x8xbf16>
    %50 = vector.extract_strided_slice %47 {offsets = [32, 0], sizes = [32, 8], strides = [1, 1]} : vector<128x8xbf16> to vector<32x8xbf16>
    %51 = vector.shape_cast %50 : vector<32x8xbf16> to vector<4x8x8xbf16>
    %52 = vector.extract_strided_slice %47 {offsets = [64, 0], sizes = [32, 8], strides = [1, 1]} : vector<128x8xbf16> to vector<32x8xbf16>
    %53 = vector.shape_cast %52 : vector<32x8xbf16> to vector<4x8x8xbf16>
    "tpu.trace_start"() <{level = 10 : i32, message = "hdl,hds->hls"}> : () -> ()
    %cst_18 = arith.constant dense<0.000000e+00> : vector<4x8x8xf32>
    %54 = tpu.matmul %49, %51, %cst_18 {dimension_numbers = #tpu.dot_dimension_numbers<[1], [1], [2], [2], [0, 0, 0, 2, 1, 2], [0], [0]>} : vector<4x8x8xbf16>, vector<4x8x8xbf16>, vector<4x8x8xf32> -> vector<4x8x8xf32>
    "tpu.trace_stop"() : () -> ()
    %55 = vector.shape_cast %5 : vector<8x8xf32> to vector<1x8x8xf32>
    %56 = vector.broadcast %55 : vector<1x8x8xf32> to vector<4x8x8xf32>
    %57 = arith.addf %54, %56 : vector<4x8x8xf32>
    %cst_19 = arith.constant dense<0xFF800000> : vector<4x8xf32>
    %58 = vector.multi_reduction <maximumf>, %57, %cst_19 [2] : vector<4x8x8xf32> to vector<4x8xf32>
    %59 = vector.shape_cast %58 : vector<4x8xf32> to vector<4x8x1xf32>
    %60 = vector.broadcast %59 : vector<4x8x1xf32> to vector<4x8x8xf32>
    %61 = arith.subf %57, %60 : vector<4x8x8xf32>
    %62 = math.exp %61 : vector<4x8x8xf32>
    %cst_20 = arith.constant dense<0.000000e+00> : vector<4x8xf32>
    %63 = vector.multi_reduction <add>, %62, %cst_20 [2] : vector<4x8x8xf32> to vector<4x8xf32>
    %64 = vector.shape_cast %63 : vector<4x8xf32> to vector<4x8x1xf32>
    %65 = tpu.reciprocal %64 {approx = true} : vector<4x8x1xf32> -> vector<4x8x1xf32>
    %66 = vector.broadcast %65 : vector<4x8x1xf32> to vector<4x8x8xf32>
    %67 = arith.mulf %62, %66 : vector<4x8x8xf32>
    %68 = arith.truncf %67 : vector<4x8x8xf32> to vector<4x8x8xbf16>
    "tpu.trace_start"() <{level = 10 : i32, message = "hds,hls->hdl"}> : () -> ()
    %cst_21 = arith.constant dense<0.000000e+00> : vector<4x8x8xf32>
    %69 = tpu.matmul %53, %68, %cst_21 {dimension_numbers = #tpu.dot_dimension_numbers<[2], [2], [1], [1], [0, 0, 0, 1, 1, 1], [0], [0]>} : vector<4x8x8xbf16>, vector<4x8x8xbf16>, vector<4x8x8xf32> -> vector<4x8x8xf32>
    "tpu.trace_stop"() : () -> ()
    %70 = vector.shape_cast %69 : vector<4x8x8xf32> to vector<32x8xf32>
    %71 = arith.truncf %70 : vector<32x8xf32> to vector<32x8xbf16>
    %cst_22 = arith.constant dense<0.000000e+00> : vector<8x32xf32>
    %72 = tpu.matmul %71, %13, %cst_22 {dimension_numbers = #tpu.dot_dimension_numbers<[0], [0], [1], [1], [0, 1, 1, 1], [], []>} : vector<32x8xbf16>, vector<32x32xbf16>, vector<8x32xf32> -> vector<8x32xf32>
    %73 = vector.broadcast %14 : vector<1x32xf32> to vector<8x32xf32>
    %74 = arith.addf %72, %73 : vector<8x32xf32>
    %75 = tpu.concatenate %44, %74 in 0 : vector<8x32xf32>, vector<8x32xf32> -> vector<16x32xf32>
    %76 = vector.shape_cast %37 : vector<4x8x8xf32> to vector<1x4x8x8xf32>
    %77 = vector.shape_cast %67 : vector<4x8x8xf32> to vector<1x4x8x8xf32>
    %78 = tpu.concatenate %76, %77 in 0 : vector<1x4x8x8xf32>, vector<1x4x8x8xf32> -> vector<2x4x8x8xf32>
    %c0_23 = arith.constant 0 : index
    %c0_24 = arith.constant 0 : index
    %c0_25 = arith.constant 0 : index
    %c0_26 = arith.constant 0 : index
    %79 = vector.load %arg11[%c0_23, %c0_24, %c0_25, %c0_26] : memref<2x4x8x8xf32, #tpu.memory_space<vmem>>, vector<2x4x8x8xf32>
    tpu.vector_store %arg11[%c0_23, %c0_24, %c0_25, %c0_26], %78 {strides = array<i32>} : memref<2x4x8x8xf32, #tpu.memory_space<vmem>>, vector<2x4x8x8xf32>,
    %80 = arith.addf %2, %75 : vector<16x32xf32>
    %81 = vector.extract_strided_slice %0 {offsets = [4, 0], sizes = [1, 32], strides = [1, 1]} : vector<10x128xf32> to vector<1x32xf32>
    %82 = vector.extract_strided_slice %0 {offsets = [5, 0], sizes = [1, 32], strides = [1, 1]} : vector<10x128xf32> to vector<1x32xf32>
    %cst_27 = arith.constant dense<0.000000e+00> : vector<16xf32>
    %83 = vector.multi_reduction <add>, %80, %cst_27 [1] : vector<16x32xf32> to vector<16xf32>
    %84 = vector.shape_cast %83 : vector<16xf32> to vector<16x1xf32>
    %cst_28 = arith.constant 3.200000e+01 : f32
    %85 = vector.broadcast %cst_28 : f32 to vector<16x1xf32>
    %86 = arith.divf %84, %85 : vector<16x1xf32>
    %87 = vector.broadcast %86 : vector<16x1xf32> to vector<16x32xf32>
    %88 = arith.subf %80, %87 : vector<16x32xf32>
    %89 = arith.mulf %88, %88 : vector<16x32xf32>
    %cst_29 = arith.constant dense<0.000000e+00> : vector<16xf32>
    %90 = vector.multi_reduction <add>, %89, %cst_29 [1] : vector<16x32xf32> to vector<16xf32>
    %91 = vector.shape_cast %90 : vector<16xf32> to vector<16x1xf32>
    %cst_30 = arith.constant 3.200000e+01 : f32
    %92 = vector.broadcast %cst_30 : f32 to vector<16x1xf32>
    %93 = arith.divf %91, %92 : vector<16x1xf32>
    %94 = vector.broadcast %86 : vector<16x1xf32> to vector<16x32xf32>
    %95 = arith.subf %80, %94 : vector<16x32xf32>
    %cst_31 = arith.constant 9.99999997E-7 : f32
    %96 = vector.broadcast %cst_31 : f32 to vector<16x1xf32>
    %97 = arith.addf %93, %96 : vector<16x1xf32>
    %98 = math.rsqrt %97 : vector<16x1xf32>
    %99 = vector.broadcast %98 : vector<16x1xf32> to vector<16x32xf32>
    %100 = arith.mulf %95, %99 : vector<16x32xf32>
    %101 = vector.broadcast %81 : vector<1x32xf32> to vector<16x32xf32>
    %102 = arith.mulf %100, %101 : vector<16x32xf32>
    %103 = vector.broadcast %82 : vector<1x32xf32> to vector<16x32xf32>
    %104 = arith.addf %102, %103 : vector<16x32xf32>
    %c0_32 = arith.constant 0 : index
    %c0_33 = arith.constant 0 : index
    %105 = vector.load %arg6[%c0_32, %c0_33] : memref<32x128xbf16, #tpu.memory_space<vmem>>, vector<32x128xbf16>
    %106 = vector.extract_strided_slice %0 {offsets = [1, 0], sizes = [1, 128], strides = [1, 1]} : vector<10x128xf32> to vector<1x128xf32>
    %107 = arith.truncf %104 : vector<16x32xf32> to vector<16x32xbf16>
    %cst_34 = arith.constant dense<0.000000e+00> : vector<16x128xf32>
    %108 = tpu.matmul %107, %105, %cst_34 {dimension_numbers = #tpu.dot_dimension_numbers<[1], [0], [0], [1], [0, 0, 1, 1], [], []>} : vector<16x32xbf16>, vector<32x128xbf16>, vector<16x128xf32> -> vector<16x128xf32>
    %109 = vector.broadcast %106 : vector<1x128xf32> to vector<16x128xf32>
    %110 = arith.addf %108, %109 : vector<16x128xf32>
    %111 = arith.truncf %4 : vector<16x32xf32> to vector<16x32xbf16>
    %cst_35 = arith.constant dense<0.000000e+00> : vector<16x128xf32>
    %112 = tpu.matmul %111, %105, %cst_35 {dimension_numbers = #tpu.dot_dimension_numbers<[1], [0], [0], [1], [0, 0, 1, 1], [], []>} : vector<16x32xbf16>, vector<32x128xbf16>, vector<16x128xf32> -> vector<16x128xf32>
    %113 = vector.broadcast %106 : vector<1x128xf32> to vector<16x128xf32>
    %114 = arith.addf %112, %113 : vector<16x128xf32>
    %115 = vector.extract_strided_slice %105 {offsets = [0, 96], sizes = [32, 32], strides = [1, 1]} : vector<32x128xbf16> to vector<32x32xbf16>
    %116 = vector.extract_strided_slice %106 {offsets = [0, 96], sizes = [1, 32], strides = [1, 1]} : vector<1x128xf32> to vector<1x32xf32>
    %117 = vector.extract_strided_slice %110 {offsets = [0, 0], sizes = [8, 128], strides = [1, 1]} : vector<16x128xf32> to vector<8x128xf32>
    %118 = tpu.transpose %117, [1, 0] : vector<8x128xf32> -> vector<128x8xf32>
    %119 = arith.truncf %118 : vector<128x8xf32> to vector<128x8xbf16>
    %120 = vector.extract_strided_slice %114 {offsets = [0, 0], sizes = [8, 128], strides = [1, 1]} : vector<16x128xf32> to vector<8x128xf32>
    %121 = tpu.transpose %120, [1, 0] : vector<8x128xf32> -> vector<128x8xf32>
    %122 = arith.truncf %121 : vector<128x8xf32> to vector<128x8xbf16>
    %123 = vector.extract_strided_slice %119 {offsets = [0, 0], sizes = [32, 8], strides = [1, 1]} : vector<128x8xbf16> to vector<32x8xbf16>
    %124 = vector.shape_cast %123 : vector<32x8xbf16> to vector<4x8x8xbf16>
    %125 = vector.extract_strided_slice %122 {offsets = [32, 0], sizes = [32, 8], strides = [1, 1]} : vector<128x8xbf16> to vector<32x8xbf16>
    %126 = vector.shape_cast %125 : vector<32x8xbf16> to vector<4x8x8xbf16>
    %127 = vector.extract_strided_slice %122 {offsets = [64, 0], sizes = [32, 8], strides = [1, 1]} : vector<128x8xbf16> to vector<32x8xbf16>
    %128 = vector.shape_cast %127 : vector<32x8xbf16> to vector<4x8x8xbf16>
    "tpu.trace_start"() <{level = 10 : i32, message = "hdl,hds->hls"}> : () -> ()
    %cst_36 = arith.constant dense<0.000000e+00> : vector<4x8x8xf32>
    %129 = tpu.matmul %124, %126, %cst_36 {dimension_numbers = #tpu.dot_dimension_numbers<[1], [1], [2], [2], [0, 0, 0, 2, 1, 2], [0], [0]>} : vector<4x8x8xbf16>, vector<4x8x8xbf16>, vector<4x8x8xf32> -> vector<4x8x8xf32>
    "tpu.trace_stop"() : () -> ()
    %130 = vector.extract_strided_slice %6 {offsets = [0, 0], sizes = [1, 8], strides = [1, 1]} : vector<2x8xf32> to vector<1x8xf32>
    %131 = vector.shape_cast %130 : vector<1x8xf32> to vector<1x1x8xf32>
    %132 = vector.broadcast %131 : vector<1x1x8xf32> to vector<4x8x8xf32>
    %133 = arith.addf %129, %132 : vector<4x8x8xf32>
    %cst_37 = arith.constant dense<0xFF800000> : vector<4x8xf32>
    %134 = vector.multi_reduction <maximumf>, %133, %cst_37 [2] : vector<4x8x8xf32> to vector<4x8xf32>
    %135 = vector.shape_cast %134 : vector<4x8xf32> to vector<4x8x1xf32>
    %136 = vector.broadcast %135 : vector<4x8x1xf32> to vector<4x8x8xf32>
    %137 = arith.subf %133, %136 : vector<4x8x8xf32>
    %138 = math.exp %137 : vector<4x8x8xf32>
    %cst_38 = arith.constant dense<0.000000e+00> : vector<4x8xf32>
    %139 = vector.multi_reduction <add>, %138, %cst_38 [2] : vector<4x8x8xf32> to vector<4x8xf32>
    %140 = vector.shape_cast %139 : vector<4x8xf32> to vector<4x8x1xf32>
    %141 = tpu.reciprocal %140 {approx = true} : vector<4x8x1xf32> -> vector<4x8x1xf32>
    %142 = vector.broadcast %141 : vector<4x8x1xf32> to vector<4x8x8xf32>
    %143 = arith.mulf %138, %142 : vector<4x8x8xf32>
    %144 = arith.truncf %143 : vector<4x8x8xf32> to vector<4x8x8xbf16>
    "tpu.trace_start"() <{level = 10 : i32, message = "hds,hls->hdl"}> : () -> ()
    %cst_39 = arith.constant dense<0.000000e+00> : vector<4x8x8xf32>
    %145 = tpu.matmul %128, %144, %cst_39 {dimension_numbers = #tpu.dot_dimension_numbers<[2], [2], [1], [1], [0, 0, 0, 1, 1, 1], [0], [0]>} : vector<4x8x8xbf16>, vector<4x8x8xbf16>, vector<4x8x8xf32> -> vector<4x8x8xf32>
    "tpu.trace_stop"() : () -> ()
    %146 = vector.shape_cast %145 : vector<4x8x8xf32> to vector<32x8xf32>
    %147 = arith.truncf %146 : vector<32x8xf32> to vector<32x8xbf16>
    %cst_40 = arith.constant dense<0.000000e+00> : vector<8x32xf32>
    %148 = tpu.matmul %147, %115, %cst_40 {dimension_numbers = #tpu.dot_dimension_numbers<[0], [0], [1], [1], [0, 1, 1, 1], [], []>} : vector<32x8xbf16>, vector<32x32xbf16>, vector<8x32xf32> -> vector<8x32xf32>
    %149 = vector.broadcast %116 : vector<1x32xf32> to vector<8x32xf32>
    %150 = arith.addf %148, %149 : vector<8x32xf32>
    %151 = vector.extract_strided_slice %110 {offsets = [8, 0], sizes = [8, 128], strides = [1, 1]} : vector<16x128xf32> to vector<8x128xf32>
    %152 = tpu.transpose %151, [1, 0] : vector<8x128xf32> -> vector<128x8xf32>
    %153 = arith.truncf %152 : vector<128x8xf32> to vector<128x8xbf16>
    %154 = vector.extract_strided_slice %114 {offsets = [8, 0], sizes = [8, 128], strides = [1, 1]} : vector<16x128xf32> to vector<8x128xf32>
    %155 = tpu.transpose %154, [1, 0] : vector<8x128xf32> -> vector<128x8xf32>
    %156 = arith.truncf %155 : vector<128x8xf32> to vector<128x8xbf16>
    %157 = vector.extract_strided_slice %153 {offsets = [0, 0], sizes = [32, 8], strides = [1, 1]} : vector<128x8xbf16> to vector<32x8xbf16>
    %158 = vector.shape_cast %157 : vector<32x8xbf16> to vector<4x8x8xbf16>
    %159 = vector.extract_strided_slice %156 {offsets = [32, 0], sizes = [32, 8], strides = [1, 1]} : vector<128x8xbf16> to vector<32x8xbf16>
    %160 = vector.shape_cast %159 : vector<32x8xbf16> to vector<4x8x8xbf16>
    %161 = vector.extract_strided_slice %156 {offsets = [64, 0], sizes = [32, 8], strides = [1, 1]} : vector<128x8xbf16> to vector<32x8xbf16>
    %162 = vector.shape_cast %161 : vector<32x8xbf16> to vector<4x8x8xbf16>
    "tpu.trace_start"() <{level = 10 : i32, message = "hdl,hds->hls"}> : () -> ()
    %cst_41 = arith.constant dense<0.000000e+00> : vector<4x8x8xf32>
    %163 = tpu.matmul %158, %160, %cst_41 {dimension_numbers = #tpu.dot_dimension_numbers<[1], [1], [2], [2], [0, 0, 0, 2, 1, 2], [0], [0]>} : vector<4x8x8xbf16>, vector<4x8x8xbf16>, vector<4x8x8xf32> -> vector<4x8x8xf32>
    "tpu.trace_stop"() : () -> ()
    %164 = vector.extract_strided_slice %6 {offsets = [1, 0], sizes = [1, 8], strides = [1, 1]} : vector<2x8xf32> to vector<1x8xf32>
    %165 = vector.shape_cast %164 : vector<1x8xf32> to vector<1x1x8xf32>
    %166 = vector.broadcast %165 : vector<1x1x8xf32> to vector<4x8x8xf32>
    %167 = arith.addf %163, %166 : vector<4x8x8xf32>
    %cst_42 = arith.constant dense<0xFF800000> : vector<4x8xf32>
    %168 = vector.multi_reduction <maximumf>, %167, %cst_42 [2] : vector<4x8x8xf32> to vector<4x8xf32>
    %169 = vector.shape_cast %168 : vector<4x8xf32> to vector<4x8x1xf32>
    %170 = vector.broadcast %169 : vector<4x8x1xf32> to vector<4x8x8xf32>
    %171 = arith.subf %167, %170 : vector<4x8x8xf32>
    %172 = math.exp %171 : vector<4x8x8xf32>
    %cst_43 = arith.constant dense<0.000000e+00> : vector<4x8xf32>
    %173 = vector.multi_reduction <add>, %172, %cst_43 [2] : vector<4x8x8xf32> to vector<4x8xf32>
    %174 = vector.shape_cast %173 : vector<4x8xf32> to vector<4x8x1xf32>
    %175 = tpu.reciprocal %174 {approx = true} : vector<4x8x1xf32> -> vector<4x8x1xf32>
    %176 = vector.broadcast %175 : vector<4x8x1xf32> to vector<4x8x8xf32>
    %177 = arith.mulf %172, %176 : vector<4x8x8xf32>
    %178 = arith.truncf %177 : vector<4x8x8xf32> to vector<4x8x8xbf16>
    "tpu.trace_start"() <{level = 10 : i32, message = "hds,hls->hdl"}> : () -> ()
    %cst_44 = arith.constant dense<0.000000e+00> : vector<4x8x8xf32>
    %179 = tpu.matmul %162, %178, %cst_44 {dimension_numbers = #tpu.dot_dimension_numbers<[2], [2], [1], [1], [0, 0, 0, 1, 1, 1], [0], [0]>} : vector<4x8x8xbf16>, vector<4x8x8xbf16>, vector<4x8x8xf32> -> vector<4x8x8xf32>
    "tpu.trace_stop"() : () -> ()
    %180 = vector.shape_cast %179 : vector<4x8x8xf32> to vector<32x8xf32>
    %181 = arith.truncf %180 : vector<32x8xf32> to vector<32x8xbf16>
    %cst_45 = arith.constant dense<0.000000e+00> : vector<8x32xf32>
    %182 = tpu.matmul %181, %115, %cst_45 {dimension_numbers = #tpu.dot_dimension_numbers<[0], [0], [1], [1], [0, 1, 1, 1], [], []>} : vector<32x8xbf16>, vector<32x32xbf16>, vector<8x32xf32> -> vector<8x32xf32>
    %183 = vector.broadcast %116 : vector<1x32xf32> to vector<8x32xf32>
    %184 = arith.addf %182, %183 : vector<8x32xf32>
    %185 = tpu.concatenate %150, %184 in 0 : vector<8x32xf32>, vector<8x32xf32> -> vector<16x32xf32>
    %186 = vector.shape_cast %143 : vector<4x8x8xf32> to vector<1x4x8x8xf32>
    %187 = vector.shape_cast %177 : vector<4x8x8xf32> to vector<1x4x8x8xf32>
    %188 = tpu.concatenate %186, %187 in 0 : vector<1x4x8x8xf32>, vector<1x4x8x8xf32> -> vector<2x4x8x8xf32>
    %c0_46 = arith.constant 0 : index
    %c0_47 = arith.constant 0 : index
    %c0_48 = arith.constant 0 : index
    %c0_49 = arith.constant 0 : index
    %189 = vector.load %arg12[%c0_46, %c0_47, %c0_48, %c0_49] : memref<2x4x8x8xf32, #tpu.memory_space<vmem>>, vector<2x4x8x8xf32>
    tpu.vector_store %arg12[%c0_46, %c0_47, %c0_48, %c0_49], %188 {strides = array<i32>} : memref<2x4x8x8xf32, #tpu.memory_space<vmem>>, vector<2x4x8x8xf32>,
    %190 = arith.addf %185, %104 : vector<16x32xf32>
    %191 = vector.extract_strided_slice %0 {offsets = [6, 0], sizes = [1, 32], strides = [1, 1]} : vector<10x128xf32> to vector<1x32xf32>
    %192 = vector.extract_strided_slice %0 {offsets = [7, 0], sizes = [1, 32], strides = [1, 1]} : vector<10x128xf32> to vector<1x32xf32>
    %cst_50 = arith.constant dense<0.000000e+00> : vector<16xf32>
    %193 = vector.multi_reduction <add>, %190, %cst_50 [1] : vector<16x32xf32> to vector<16xf32>
    %194 = vector.shape_cast %193 : vector<16xf32> to vector<16x1xf32>
    %cst_51 = arith.constant 3.200000e+01 : f32
    %195 = vector.broadcast %cst_51 : f32 to vector<16x1xf32>
    %196 = arith.divf %194, %195 : vector<16x1xf32>
    %197 = vector.broadcast %196 : vector<16x1xf32> to vector<16x32xf32>
    %198 = arith.subf %190, %197 : vector<16x32xf32>
    %199 = arith.mulf %198, %198 : vector<16x32xf32>
    %cst_52 = arith.constant dense<0.000000e+00> : vector<16xf32>
    %200 = vector.multi_reduction <add>, %199, %cst_52 [1] : vector<16x32xf32> to vector<16xf32>
    %201 = vector.shape_cast %200 : vector<16xf32> to vector<16x1xf32>
    %cst_53 = arith.constant 3.200000e+01 : f32
    %202 = vector.broadcast %cst_53 : f32 to vector<16x1xf32>
    %203 = arith.divf %201, %202 : vector<16x1xf32>
    %204 = vector.broadcast %196 : vector<16x1xf32> to vector<16x32xf32>
    %205 = arith.subf %190, %204 : vector<16x32xf32>
    %cst_54 = arith.constant 9.99999997E-7 : f32
    %206 = vector.broadcast %cst_54 : f32 to vector<16x1xf32>
    %207 = arith.addf %203, %206 : vector<16x1xf32>
    %208 = math.rsqrt %207 : vector<16x1xf32>
    %209 = vector.broadcast %208 : vector<16x1xf32> to vector<16x32xf32>
    %210 = arith.mulf %205, %209 : vector<16x32xf32>
    %211 = vector.broadcast %191 : vector<1x32xf32> to vector<16x32xf32>
    %212 = arith.mulf %210, %211 : vector<16x32xf32>
    %213 = vector.broadcast %192 : vector<1x32xf32> to vector<16x32xf32>
    %214 = arith.addf %212, %213 : vector<16x32xf32>
    %215 = arith.truncf %214 : vector<16x32xf32> to vector<16x32xbf16>
    %c0_55 = arith.constant 0 : index
    %c0_56 = arith.constant 0 : index
    %216 = vector.load %arg7[%c0_55, %c0_56] : memref<32x64xbf16, #tpu.memory_space<vmem>>, vector<32x64xbf16>
    %cst_57 = arith.constant dense<0.000000e+00> : vector<16x64xf32>
    %217 = tpu.matmul %215, %216, %cst_57 {dimension_numbers = #tpu.dot_dimension_numbers<[1], [0], [0], [1], [0, 0, 1, 1], [], []>} : vector<16x32xbf16>, vector<32x64xbf16>, vector<16x64xf32> -> vector<16x64xf32>
    %218 = vector.extract_strided_slice %0 {offsets = [2, 0], sizes = [1, 64], strides = [1, 1]} : vector<10x128xf32> to vector<1x64xf32>
    %219 = vector.broadcast %218 : vector<1x64xf32> to vector<16x64xf32>
    %220 = arith.addf %217, %219 : vector<16x64xf32>
    %cst_58 = arith.constant 0.000000e+00 : f32
    %221 = vector.broadcast %cst_58 : f32 to vector<16x64xf32>
    %222 = arith.maximumf %220, %221 : vector<16x64xf32>
    %223 = arith.truncf %222 : vector<16x64xf32> to vector<16x64xbf16>
    %c0_59 = arith.constant 0 : index
    %c0_60 = arith.constant 0 : index
    %224 = vector.load %arg8[%c0_59, %c0_60] : memref<64x32xbf16, #tpu.memory_space<vmem>>, vector<64x32xbf16>
    %cst_61 = arith.constant dense<0.000000e+00> : vector<16x32xf32>
    %225 = tpu.matmul %223, %224, %cst_61 {dimension_numbers = #tpu.dot_dimension_numbers<[1], [0], [0], [1], [0, 0, 1, 1], [], []>} : vector<16x64xbf16>, vector<64x32xbf16>, vector<16x32xf32> -> vector<16x32xf32>
    %226 = vector.extract_strided_slice %0 {offsets = [3, 0], sizes = [1, 32], strides = [1, 1]} : vector<10x128xf32> to vector<1x32xf32>
    %227 = vector.broadcast %226 : vector<1x32xf32> to vector<16x32xf32>
    %228 = arith.addf %225, %227 : vector<16x32xf32>
    %229 = arith.addf %228, %214 : vector<16x32xf32>
    %230 = vector.extract_strided_slice %0 {offsets = [8, 0], sizes = [1, 32], strides = [1, 1]} : vector<10x128xf32> to vector<1x32xf32>
    %231 = vector.extract_strided_slice %0 {offsets = [9, 0], sizes = [1, 32], strides = [1, 1]} : vector<10x128xf32> to vector<1x32xf32>
    %cst_62 = arith.constant dense<0.000000e+00> : vector<16xf32>
    %232 = vector.multi_reduction <add>, %229, %cst_62 [1] : vector<16x32xf32> to vector<16xf32>
    %233 = vector.shape_cast %232 : vector<16xf32> to vector<16x1xf32>
    %cst_63 = arith.constant 3.200000e+01 : f32
    %234 = vector.broadcast %cst_63 : f32 to vector<16x1xf32>
    %235 = arith.divf %233, %234 : vector<16x1xf32>
    %236 = vector.broadcast %235 : vector<16x1xf32> to vector<16x32xf32>
    %237 = arith.subf %229, %236 : vector<16x32xf32>
    %238 = arith.mulf %237, %237 : vector<16x32xf32>
    %cst_64 = arith.constant dense<0.000000e+00> : vector<16xf32>
    %239 = vector.multi_reduction <add>, %238, %cst_64 [1] : vector<16x32xf32> to vector<16xf32>
    %240 = vector.shape_cast %239 : vector<16xf32> to vector<16x1xf32>
    %cst_65 = arith.constant 3.200000e+01 : f32
    %241 = vector.broadcast %cst_65 : f32 to vector<16x1xf32>
    %242 = arith.divf %240, %241 : vector<16x1xf32>
    %243 = vector.broadcast %235 : vector<16x1xf32> to vector<16x32xf32>
    %244 = arith.subf %229, %243 : vector<16x32xf32>
    %cst_66 = arith.constant 9.99999997E-7 : f32
    %245 = vector.broadcast %cst_66 : f32 to vector<16x1xf32>
    %246 = arith.addf %242, %245 : vector<16x1xf32>
    %247 = math.rsqrt %246 : vector<16x1xf32>
    %248 = vector.broadcast %247 : vector<16x1xf32> to vector<16x32xf32>
    %249 = arith.mulf %244, %248 : vector<16x32xf32>
    %250 = vector.broadcast %230 : vector<1x32xf32> to vector<16x32xf32>
    %251 = arith.mulf %249, %250 : vector<16x32xf32>
    %252 = vector.broadcast %231 : vector<1x32xf32> to vector<16x32xf32>
    %253 = arith.addf %251, %252 : vector<16x32xf32>
    %254 = vector.shape_cast %253 : vector<16x32xf32> to vector<2x8x32xf32>
    %c0_67 = arith.constant 0 : index
    %c0_68 = arith.constant 0 : index
    %c0_69 = arith.constant 0 : index
    %255 = vector.load %arg10[%c0_67, %c0_68, %c0_69] : memref<2x8x32xf32, #tpu.memory_space<vmem>>, vector<2x8x32xf32>
    tpu.vector_store %arg10[%c0_67, %c0_68, %c0_69], %254 {strides = array<i32>} : memref<2x8x32xf32, #tpu.memory_space<vmem>>, vector<2x8x32xf32>,
    return
  }
  func.func @transform_0(%arg0: i32) -> (i32, i32, i32) {
    %c0_i32 = arith.constant 0 : i32
    %c0_i32_0 = arith.constant 0 : i32
    %c0_i32_1 = arith.constant 0 : i32
    return %arg0, %c0_i32, %c0_i32_0 : i32, i32, i32
  }
  func.func @transform_1(%arg0: i32) -> (i32, i32, i32) {
    %c0_i32 = arith.constant 0 : i32
    %c0_i32_0 = arith.constant 0 : i32
    %c0_i32_1 = arith.constant 0 : i32
    return %arg0, %c0_i32, %c0_i32_0 : i32, i32, i32
  }
  func.func @transform_2(%arg0: i32) -> (i32, i32) {
    %c0_i32 = arith.constant 0 : i32
    %c0_i32_0 = arith.constant 0 : i32
    %c0_i32_1 = arith.constant 0 : i32
    return %c0_i32, %c0_i32_0 : i32, i32
  }
  func.func @transform_3(%arg0: i32) -> (i32, i32) {
    %c0_i32 = arith.constant 0 : i32
    %c0_i32_0 = arith.constant 0 : i32
    return %arg0, %c0_i32 : i32, i32
  }
  func.func @transform_4(%arg0: i32) -> (i32, i32) {
    %c0_i32 = arith.constant 0 : i32
    %c0_i32_0 = arith.constant 0 : i32
    %c0_i32_1 = arith.constant 0 : i32
    return %c0_i32, %c0_i32_0 : i32, i32
  }
  func.func @transform_5(%arg0: i32) -> (i32, i32) {
    %c0_i32 = arith.constant 0 : i32
    %c0_i32_0 = arith.constant 0 : i32
    %c0_i32_1 = arith.constant 0 : i32
    return %c0_i32, %c0_i32_0 : i32, i32
  }
  func.func @transform_6(%arg0: i32) -> (i32, i32) {
    %c0_i32 = arith.constant 0 : i32
    %c0_i32_0 = arith.constant 0 : i32
    %c0_i32_1 = arith.constant 0 : i32
    return %c0_i32, %c0_i32_0 : i32, i32
  }
  func.func @transform_7(%arg0: i32) -> (i32, i32) {
    %c0_i32 = arith.constant 0 : i32
    %c0_i32_0 = arith.constant 0 : i32
    %c0_i32_1 = arith.constant 0 : i32
    return %c0_i32, %c0_i32_0 : i32, i32
  }
  func.func @transform_8(%arg0: i32) -> (i32, i32) {
    %c0_i32 = arith.constant 0 : i32
    %c0_i32_0 = arith.constant 0 : i32
    %c0_i32_1 = arith.constant 0 : i32
    return %c0_i32, %c0_i32_0 : i32, i32
  }
  func.func @transform_9(%arg0: i32) -> (i32, i32, i32) {
    %c0_i32 = arith.constant 0 : i32
    %c0_i32_0 = arith.constant 0 : i32
    %c0_i32_1 = arith.constant 0 : i32
    return %arg0, %c0_i32, %c0_i32_0 : i32, i32, i32
  }
  func.func @transform_10(%arg0: i32) -> (i32, i32, i32, i32) {
    %c0_i32 = arith.constant 0 : i32
    %c0_i32_0 = arith.constant 0 : i32
    %c0_i32_1 = arith.constant 0 : i32
    %c0_i32_2 = arith.constant 0 : i32
    return %arg0, %c0_i32, %c0_i32_0, %c0_i32_1 : i32, i32, i32, i32
  }
  func.func @transform_11(%arg0: i32) -> (i32, i32, i32, i32) {
    %c0_i32 = arith.constant 0 : i32
    %c0_i32_0 = arith.constant 0 : i32
    %c0_i32_1 = arith.constant 0 : i32
    %c0_i32_2 = arith.constant 0 : i32
    return %arg0, %c0_i32, %c0_i32_0, %c0_i32_1 : i32, i32, i32, i32
  }
}

</mosaic_0001>

<bundles_post_ra>
// kernel: tpu_custom_call.1
= control target key start
LH: loop header
LB: loop body
LE: loop exit
PB: predicated region body
PF: predicated region fallthrough
CT: control target
= control target key end

     0   :  { %17 = vsyncpa [#allocation3], 0  ;;  %s4605_s0 = inlined_call_operand.vmem [shape: f32[2,8,32], index: 0, kind: input, shape index: {}]   ;;  %s4606_s1 = inlined_call_operand.vmem [shape: f32[2,8,32], index: 1, kind: input, shape index: {}]   ;;  %s4607_s2 = inlined_call_operand.hbm [shape: f32[8,8], index: 2, kind: input, shape index: {}]   ;;  %s4608_s3 = inlined_call_operand.vmem [shape: f32[2,8], index: 3, kind: input, shape index: {}]   ;;  %s4609_s4 = inlined_call_operand.vmem [shape: bf16[32,128], index: 4, kind: input, shape index: {}]   ;;  %s4610_s5 = inlined_call_operand.hbm [shape: bf16[32,128], index: 5, kind: input, shape index: {}]   ;;  %s4611_s6 = inlined_call_operand.hbm [shape: bf16[32,64], index: 6, kind: input, shape index: {}]   ;;  %s4612_s7 = inlined_call_operand.vmem [shape: bf16[64,32], index: 7, kind: input, shape index: {}]   ;;  %s4613_s8 = inlined_call_operand.hbm [shape: f32[10,128], index: 8, kind: input, shape index: {}]   ;;  %s4614_s9 = inlined_call_operand.hbm [shape: f32[2,8,32], index: 9, kind: output, shape index: {0}]   ;;  %s4615_s10 = inlined_call_operand.hbm [shape: f32[2,4,8,8], index: 10, kind: output, shape index: {1}]   ;;  %s4616_s11 = inlined_call_operand.hbm [shape: f32[2,4,8,8], index: 11, kind: output, shape index: {2}]  }
   0x1   :  { %18 = vsyncpa [#allocation6], 0 }
   0x2   :  { %19 = vsyncpa [#allocation9], 0 }
   0x3   :  { %20 = vsyncpa [#allocation4], 0 }
   0x4   :  { %21 = vsyncpa [#allocation12], 0  ;;  %s3933_s17 = smov [#allocation5]   ;;  %s3769_s21 = scalar_lea.hbm %s4610_s5, 256 }
   0x5   :  { %s45_s18 = sshll.u32 %s3933_s17, 4  ;;  %p3770_p0 = scmp.ne.s32.totalorder %s4610_s5, %s3769_s21  ;;  %s46_s18 = int_to_ptr.vmem [resolvable:$true] %s45_s18 }
   0x6   :  { %p3773_p1 = scmp.lt.u32.totalorder %s3769_s21, %s4610_s5 }
   0x8   :  { %p3775_p2 = pnand %p3773_p1, %p3770_p0 }
   0xa   :  { %3778 = shalt.err (!%p3775_p2)
}
   0xb   :  { %s3779_s26 = scalar_lea.vmem %s46_s18, 256  ;;  %p3784_p4 = scmp.lt.s32.totalorder %s46_s18, %s46_s18 }
   0xc   :  { %p3780_p3 = scmp.ne.s32.totalorder %s46_s18, %s3779_s26  ;;  %p3785_p5 = scmp.lt.s32.totalorder %s3779_s26, %s3779_s26 }
   0xe   :  { %p3786_p6 = por %p3785_p5, %p3784_p4 }
  0x10   :  { %p3787_p7 = pnand %p3786_p6, %p3780_p3 }
  0x12   :  { %3790 = shalt.err (!%p3787_p7)
}
  0x13   :  { %s3934_s27 = smov 64   ;;  %s3935_s28 = smov 4  }
  0x14   :  { %51 = dma.hbm_to_vmem [thread:$0]  %s4610_s5, 256, %s46_s18, [#allocation6], %s3934_s27, %s3934_s27, %s3935_s28  }
  0x15   :  { %s3936_s12 = smov [#allocation2]   ;;  %s3937_s14 = smov [#allocation7]  }
  0x16   :  { %s32_s13 = sshll.u32 %s3936_s12, 4  ;;  %s57_s15 = sshll.u32 %s3937_s14, 4  ;;  %s33_s13 = int_to_ptr.vmem [resolvable:$true] %s32_s13  ;;  %s58_s15 = int_to_ptr.vmem [resolvable:$true] %s57_s15 }
  0x17   :  { %s3791_s19 = scalar_lea.hbm %s4607_s2, 128 }
  0x18   :  { %p3792_p8 = scmp.ne.s32.totalorder %s4607_s2, %s3791_s19  ;;  %p3795_p9 = scmp.lt.u32.totalorder %s3791_s19, %s4607_s2 }
  0x1a   :  { %p3797_p10 = pnand %p3795_p9, %p3792_p8 }
  0x1c   :  { %3800 = shalt.err (!%p3797_p10)
}
  0x1d   :  { %s3801_s5 = scalar_lea.vmem %s33_s13, 128  ;;  %p3806_p12 = scmp.lt.s32.totalorder %s33_s13, %s33_s13 }
  0x1e   :  { %p3802_p11 = scmp.ne.s32.totalorder %s33_s13, %s3801_s5  ;;  %p3807_p13 = scmp.lt.s32.totalorder %s3801_s5, %s3801_s5 }
  0x20   :  { %p3808_p0 = por %p3807_p13, %p3806_p12 }
  0x22   :  { %p3809_p1 = pnand %p3808_p0, %p3802_p11 }
  0x24   :  { %3812 = shalt.err (!%p3809_p1)
}
  0x25   :  { %35 = dma.hbm_to_vmem [thread:$0]  %s4607_s2, 128, %s33_s13, [#allocation3]  }
  0x26   :  { %s3813_s29 = scalar_lea.hbm %s4611_s6, 256 }
  0x27   :  { %p3814_p2 = scmp.ne.s32.totalorder %s4611_s6, %s3813_s29  ;;  %p3817_p3 = scmp.lt.u32.totalorder %s3813_s29, %s4611_s6 }
  0x29   :  { %p3819_p4 = pnand %p3817_p3, %p3814_p2 }
  0x2b   :  { %3822 = shalt.err (!%p3819_p4)
}
  0x2c   :  { %s3823_s17 = scalar_lea.vmem %s58_s15, 256  ;;  %p3828_p6 = scmp.lt.s32.totalorder %s58_s15, %s58_s15 }
  0x2d   :  { %p3824_p5 = scmp.ne.s32.totalorder %s58_s15, %s3823_s17  ;;  %p3829_p7 = scmp.lt.s32.totalorder %s3823_s17, %s3823_s17 }
  0x2f   :  { %p3830_p8 = por %p3829_p7, %p3828_p6 }
  0x31   :  { %p3831_p9 = pnand %p3830_p8, %p3824_p5 }
  0x33   :  { %3834 = shalt.err (!%p3831_p9)
}
  0x34   :  { %63 = dma.hbm_to_vmem [thread:$0]  %s4611_s6, 256, %s58_s15, [#allocation6], %s3934_s27, %s3934_s27, %s3935_s28  }
  0x35   :  { %s3938_s19 = smov [#allocation8]   ;;  %s3835_s23 = scalar_lea.hbm %s4613_s8, 256 }
  0x36   :  { %s71_s20 = sshll.u32 %s3938_s19, 4  ;;  %p3836_p10 = scmp.ne.s32.totalorder %s4613_s8, %s3835_s23  ;;  %s72_s20 = int_to_ptr.vmem [resolvable:$true] %s71_s20 }
  0x37   :  { %p3839_p11 = scmp.lt.u32.totalorder %s3835_s23, %s4613_s8 }
  0x39   :  { %p3841_p12 = pnand %p3839_p11, %p3836_p10 }
  0x3b   :  { %3844 = shalt.err (!%p3841_p12)
}
  0x3c   :  { %s3845_s26 = scalar_lea.vmem %s72_s20, 256  ;;  %p3850_p0 = scmp.lt.s32.totalorder %s72_s20, %s72_s20 }
  0x3d   :  { %p3846_p13 = scmp.ne.s32.totalorder %s72_s20, %s3845_s26  ;;  %p3851_p1 = scmp.lt.s32.totalorder %s3845_s26, %s3845_s26 }
  0x3f   :  { %p3852_p2 = por %p3851_p1, %p3850_p0 }
  0x41   :  { %p3853_p3 = pnand %p3852_p2, %p3846_p13 }
  0x43   :  { %3856 = shalt.err (!%p3853_p3)
}
  0x44   :  { %s3939_s6 = smov 128   ;;  %s3940_s27 = smov 8  }
  0x45   :  { %77 = dma.hbm_to_vmem [thread:$0]  %s4613_s8, 256, %s72_s20, [#allocation9], %s3939_s6, %s3939_s6, %s3940_s27  }
  0x46   :  { %3923 = dma.done.wait [#allocation3], 128  }
  0x47   :  { %3924 = vsyncadd [#allocation3], 4294967168 }
  0x48   :  { %3925 = dma.done.wait [#allocation6], 512  }
  0x49   :  { %3926 = vsyncadd [#allocation6], 4294966784 }
  0x4a   :  { %3927 = dma.done.wait [#allocation9], 256  }
  0x4b   :  { %3928 = vsyncadd [#allocation9], 4294967040  ;;  %v3941_v0 = vmov 0.0   ;;  %vm3942_vm0 = vmmov 0   ;;  %v4073_v1 = vld [vmem:[%s4609_s4] sm:$0xff]   ;;  %v4078_v2 = vld [vmem:[%s4609_s4 + $0x8] sm:$0xff]   ;;  %v104_v6 = vlaneseq }
  0x4c   :  { %3399 = vmatprep.subr.bf16.mxu0 %v3941_v0  ;;  %3403 = vmatprep.mubr.msk.bf16.mxu0 %vm3942_vm0, %v3941_v0  ;;  %v4084_v3 = vld [vmem:[%s4605_s0] sm:$0xff]  ;;  %v4089_v4 = vld [vmem:[%s4605_s0 + $0x8] sm:$0xff]  ;;  %vm120_vm1 = vcmask 261120   ;;  %vm257_vm2 = vcmask 1043456   ;;  %vm253_vm3 = vcmask 64512   ;;  %s3943_s0 = smov 32  }
  0x4d   :  { %3413 = vmatprep.subr.bf16.mxu1 %v3941_v0  ;;  %3415 = vmatprep.mubr.msk.bf16.mxu1 %vm3942_vm0, %v3941_v0  ;;  %v103_v5 = vpack.c.bf16 %v4089_v4, %v4084_v3  ;;  %v4099_v7 = vshrl.u32 %v104_v6, 7  ;;  %v4104_v9 = vld [vmem:[#allocation8] sm:$0xff]  ;;  %v4141_v44 = vld [vmem:[#allocation2] sm:$0xff]  ;;  %vm3022_vm4 = vcmask 523264  }
  0x4e   :  { %3400 = vmatpush3.bf16.msra.mxu0 %v4073_v1 }
  0x4f   :  { %3401 = vmatprep.subr.bf16.mxu0 %v3941_v0  ;;  %v4102_v8 = vsub.s32 0, %v4099_v7 }
  0x51   :  { %v4108_v10 = vrot.slane %v4104_v9, %v4102_v8 }
  0x52   :  { %3402 = vmatpush3.bf16.msra.mxu0 %v4078_v2 }
  0x53   :  { %3407 = vmatprep.subr.bf16.mxu0 %v3941_v0 }
  0x55   :  { %3404 = vmatmul.mubr.msk.bf16.vlgmr.msra.gmra.mrb[0].mxu0 %vm120_vm1, %v103_v5 }
  0x56   :  { %3409 = vmatprep.mubr.msk.bf16.mxu0 %vm3942_vm0, %v3941_v0 }
 0x128   :  { %v158_v11 = vpop.f32.mrb[0].mxu0 }
 0x129   :  { %v3405_v12 = vpop.f32.mrb[1].mxu0  ;;  %v159_v13 = vadd.f32 %v158_v11, %v4108_v10 }
 0x12a   :  { %v4111_v14 = vpop.f32.mrb[2].mxu0 }
 0x12b   :  { %v3406_v15 = vpop.f32.mrb[3].mxu0  ;;  %165 = vxpose.xlu0.b32.start.end [1/1] (short) (narrow) %v159_v13, 96 }
 0x1ab   :  { %v181_v16 = vpop.trf.xlu0 }
 0x1ac   :  { %v3258_v17 = vpack.c.bf16 %v181_v16, %v181_v16 }
 0x1ae   :  { %237 = vxpose.xlu0.c.b16.start.end [1/1] (short) (narrow) %v3258_v17, 16 }
 0x1af   :  { %v182_v18 = vpop.trf.xlu0 }
 0x1b0   :  { %v3259_v19 = vpack.c.bf16 %v182_v18, %v182_v18 }
 0x1b2   :  { %301 = vxpose.xlu1.c.b16.start.end [1/1] (short) (narrow) %v3259_v19, 16 }
 0x1b3   :  { %v183_v20 = vpop.trf.xlu0 }
 0x1b4   :  { %v3260_v21 = vpack.c.bf16 %v183_v20, %v183_v20 }
 0x1b6   :  { %363 = vxpose.xlu1.c.b16.start.end [1/1] (short) (narrow) %v3260_v21, 16 }
 0x1b7   :  { %v184_v22 = vpop.trf.xlu0  ;;  %737 = vrot.lane.b32.xlu0 %v4073_v1, %s3943_s0 }
 0x1b8   :  { %v3261_v23 = vpack.c.bf16 %v184_v22, %v184_v22 }
 0x1ba   :  { %425 = vxpose.xlu1.c.b16.start.end [1/1] (short) (narrow) %v3261_v23, 16 }
 0x1bb   :  { %v185_v24 = vpop.trf.xlu0  ;;  %739 = vrot.lane.b32.xlu0 %v4078_v2, %s3943_s0 }
 0x1bc   :  { %v3262_v25 = vpack.c.bf16 %v185_v24, %v185_v24 }
 0x1be   :  { %v259_v26 = vsel %vm257_vm2, %v3262_v25, 0 }
 0x1bf   :  { %3408 = vmatpush3.bf16.msra.mxu0 %v259_v26  ;;  %v186_v27 = vpop.trf.xlu0 }
 0x1c0   :  { %v3263_v28 = vpack.c.bf16 %v186_v27, %v186_v27  ;;  %3419 = vmatprep.subr.bf16.mxu0 %v3941_v0 }
 0x1c2   :  { %v321_v29 = vsel %vm257_vm2, %v3263_v28, 0 }
 0x1c3   :  { %3414 = vmatpush3.bf16.msra.mxu1 %v321_v29  ;;  %v187_v30 = vpop.trf.xlu0 }
 0x1c4   :  { %3425 = vmatprep.subr.bf16.mxu1 %v3941_v0  ;;  %v3264_v36 = vpack.c.bf16 %v187_v30, %v187_v30 }
 0x1c6   :  { %v383_v39 = vsel %vm257_vm2, %v3264_v36, 0 }
 0x1c7   :  { %v188_v31 = vpop.trf.xlu0 }
 0x1c8   :  { %v3265_v38 = vpack.c.bf16 %v188_v31, %v188_v31 }
 0x1ca   :  { %v445_v41 = vsel %vm257_vm2, %v3265_v38, 0 }
 0x1cb   :  { %v4117_v32 = vpop.trf.xlu0 }
 0x1cf   :  { %v4119_v33 = vpop.trf.xlu0 }
 0x1d3   :  { %v4121_v34 = vpop.trf.xlu0 }
 0x1d7   :  { %v4123_v35 = vpop.trf.xlu0 }
 0x214   :  { %v245_v37 = vpop.trf.xlu0 }
 0x215   :  { %3410 = vmatmul.mubr.msk.bf16.vlgmr.msra.gmra.mrb[4].mxu0 %vm253_vm3, %v245_v37 }
 0x216   :  { %3420 = vmatpush3.bf16.msra.mxu0 %v383_v39  ;;  %3421 = vmatprep.mubr.msk.bf16.mxu0 %vm3942_vm0, %v3941_v0  ;;  %v162_v39 = vadd.f32 %v4111_v14, %v4108_v10 }
 0x217   :  { %3431 = vmatprep.subr.bf16.mxu0 %v3941_v0 }
 0x218   :  { %v309_v40 = vpop.trf.xlu1 }
 0x219   :  { %3416 = vmatmul.mubr.msk.bf16.vlgmr.msra.gmra.mrb[0].mxu1 %vm253_vm3, %v309_v40 }
 0x21a   :  { %3426 = vmatpush3.bf16.msra.mxu1 %v445_v41  ;;  %3427 = vmatprep.mubr.msk.bf16.mxu1 %vm3942_vm0, %v3941_v0 }
 0x21b   :  { %3437 = vmatprep.subr.bf16.mxu1 %v3941_v0 }
 0x21c   :  { %v371_v42 = vpop.trf.xlu1 }
 0x21d   :  { %3422 = vmatmul.mubr.msk.bf16.vlgmr.msra.gmra.mrb[8].mxu0 %vm253_vm3, %v371_v42 }
 0x21e   :  { %3433 = vmatprep.mubr.msk.bf16.mxu0 %vm3942_vm0, %v3941_v0 }
 0x220   :  { %v433_v43 = vpop.trf.xlu1 }
 0x221   :  { %3428 = vmatmul.mubr.msk.bf16.vlgmr.msra.gmra.mrb[4].mxu1 %vm253_vm3, %v433_v43 }
 0x222   :  { %3439 = vmatprep.mubr.msk.bf16.mxu1 %vm3942_vm0, %v3941_v0 }
 0x2e8   :  { %v295_v45 = vpop.f32.mrb[4].mxu0 }
 0x2e9   :  { %v296_v46 = vadd.f32 %v295_v45, %v4141_v44  ;;  %v3411_v47 = vpop.f32.mrb[5].mxu0 }
 0x2ea   :  { %v298_v48 = vpop.f32.mrb[6].mxu0 }
 0x2eb   :  { %v3412_v49 = vpop.f32.mrb[7].mxu0  ;;  %v487_v50 = vsel %vm253_vm3, %v296_v46, -inf }
 0x2ec   :  { %v357_v51 = vpop.f32.mrb[0].mxu1  ;;  %488 = vmax.xlane.f32.xlu1 %v487_v50 }
 0x2ed   :  { %v358_v52 = vadd.f32 %v357_v51, %v4141_v44  ;;  %v3417_v53 = vpop.f32.mrb[1].mxu1 }
 0x2ee   :  { %v360_v54 = vpop.f32.mrb[2].mxu1 }
 0x2ef   :  { %v3418_v55 = vpop.f32.mrb[3].mxu1  ;;  %v490_v56 = vsel %vm253_vm3, %v358_v52, -inf }
 0x2f0   :  { %491 = vmax.xlane.f32.xlu1 %v490_v56  ;;  %v419_v57 = vpop.f32.mrb[8].mxu0 }
 0x2f1   :  { %v420_v58 = vadd.f32 %v419_v57, %v4141_v44  ;;  %v3423_v59 = vpop.f32.mrb[9].mxu0  ;;  %v3267_v57 = vpack.c.bf16 %v4119_v33, %v4119_v33  ;;  %v3269_v33 = vpack.c.bf16 %v4123_v35, %v4123_v35 }
 0x2f2   :  { %v422_v60 = vpop.f32.mrb[10].mxu0  ;;  %v3268_v59 = vpack.c.bf16 %v4121_v34, %v4121_v34 }
 0x2f3   :  { %v3424_v61 = vpop.f32.mrb[11].mxu0  ;;  %v493_v62 = vsel %vm253_vm3, %v420_v58, -inf }
 0x2f4   :  { %v481_v63 = vpop.f32.mrb[4].mxu1  ;;  %494 = vmax.xlane.f32.xlu1 %v493_v62 }
 0x2f5   :  { %v482_v5 = vadd.f32 %v481_v63, %v4141_v44  ;;  %v3429_v6 = vpop.f32.mrb[5].mxu1 }
 0x2f6   :  { %v484_v11 = vpop.f32.mrb[6].mxu1 }
 0x2f7   :  { %v3430_v12 = vpop.f32.mrb[7].mxu1  ;;  %v496_v13 = vsel %vm253_vm3, %v482_v5, -inf }
 0x2f8   :  { %497 = vmax.xlane.f32.xlu1 %v496_v13 }
 0x379   :  { %v489_v15 = vpop.xlane.xlu1 %488 }
 0x37a   :  { %v499_v16 = vsub.f32 %v296_v46, %v489_v15 }
 0x37c   :  { %v503_v17 = vmul.f32 1.442695, %v499_v16  ;;  %v4197_v16 = vpop.permute.xlu0 %737 }
 0x37d   :  { %v492_v18 = vpop.xlane.xlu1 %491 }
 0x37e   :  { %3692 = vpow2.f32 %v503_v17  ;;  %v500_v19 = vsub.f32 %v358_v52, %v492_v18  ;;  %v3266_v52 = vpack.c.bf16 %v4117_v32, %v4117_v32 }
 0x380   :  { %v505_v20 = vmul.f32 1.442695, %v500_v19  ;;  %v4203_v18 = vpop.permute.xlu0 %739 }
 0x381   :  { %v495_v21 = vpop.xlane.xlu1 %494 }
 0x382   :  { %3694 = vpow2.f32 %v505_v20  ;;  %v501_v22 = vsub.f32 %v420_v58, %v495_v21 }
 0x384   :  { %v507_v23 = vmul.f32 1.442695, %v501_v22 }
 0x385   :  { %v498_v24 = vpop.xlane.xlu1 %497 }
 0x386   :  { %3696 = vpow2.f32 %v507_v23  ;;  %v502_v25 = vsub.f32 %v482_v5, %v498_v24 }
 0x388   :  { %v3693_v26 = vpop.eup %3692  ;;  %v509_v27 = vmul.f32 1.442695, %v502_v25 }
 0x389   :  { %v511_v28 = vsel %vm253_vm3, %v3693_v26, 0.0 }
 0x38a   :  { %3698 = vpow2.f32 %v509_v27  ;;  %512 = vadd.xlane.f32.xlu1 %v511_v28 }
 0x38c   :  { %v3695_v29 = vpop.eup %3694 }
 0x38d   :  { %v514_v30 = vsel %vm253_vm3, %v3695_v29, 0.0 }
 0x38e   :  { %515 = vadd.xlane.f32.xlu1 %v514_v30 }
 0x390   :  { %v3697_v31 = vpop.eup %3696 }
 0x391   :  { %v517_v36 = vsel %vm253_vm3, %v3697_v31, 0.0 }
 0x392   :  { %518 = vadd.xlane.f32.xlu1 %v517_v36 }
 0x394   :  { %v3699_v37 = vpop.eup %3698 }
 0x395   :  { %v520_v38 = vsel %vm253_vm3, %v3699_v37, 0.0 }
 0x396   :  { %521 = vadd.xlane.f32.xlu1 %v520_v38 }
 0x3c9   :  { %790 = vxpose.xlu1.b32.start.end [1/1] (short) (narrow) %v162_v39, 96 }
 0x417   :  { %v513_v40 = vpop.xlane.xlu1 %512 }
 0x418   :  { %3700 = vrcp.f32 %v513_v40 }
 0x41b   :  { %v516_v41 = vpop.xlane.xlu1 %515 }
 0x41c   :  { %3702 = vrcp.f32 %v516_v41 }
 0x41f   :  { %v519_v42 = vpop.xlane.xlu1 %518 }
 0x420   :  { %3704 = vrcp.f32 %v519_v42 }
 0x422   :  { %v3701_v43 = vpop.eup %3700 }
 0x423   :  { %v522_v45 = vpop.xlane.xlu1 %521  ;;  %v527_v46 = vmul.f32 %v3701_v43, %v3693_v26 }
 0x424   :  { %3706 = vrcp.f32 %v522_v45 }
 0x425   :  { %v531_v47 = vpack.c.bf16 %v527_v46, %v527_v46  ;;  %1403 = vst.msk [vmem:[#allocation11] sm:$0xff] %vm253_vm3, %v527_v46 }
 0x426   :  { %v3703_v14 = vpop.eup %3702 }
 0x427   :  { %v539_v48 = vsel %vm253_vm3, %v531_v47, 0  ;;  %v528_v1 = vmul.f32 %v3703_v14, %v3695_v29 }
 0x428   :  { %3432 = vmatpush3.bf16.xpose.msra.mxu0 %v539_v48 }
 0x429   :  { %v532_v49 = vpack.c.bf16 %v528_v1, %v528_v1  ;;  %1404 = vst.msk [vmem:[#allocation11 + $0x8] sm:$0xff] %vm253_vm3, %v528_v1  ;;  %3443 = vmatprep.subr.bf16.mxu0 %v3941_v0 }
 0x42a   :  { %v3705_v2 = vpop.eup %3704 }
 0x42b   :  { %v585_v50 = vsel %vm253_vm3, %v532_v49, 0  ;;  %v529_v51 = vmul.f32 %v3705_v2, %v3697_v31 }
 0x42c   :  { %3438 = vmatpush3.bf16.xpose.msra.mxu1 %v585_v50 }
 0x42d   :  { %v533_v53 = vpack.c.bf16 %v529_v51, %v529_v51  ;;  %1405 = vst.msk [vmem:[#allocation11 + $0x10] sm:$0xff] %vm253_vm3, %v529_v51  ;;  %3449 = vmatprep.subr.bf16.mxu1 %v3941_v0 }
 0x42e   :  { %v3707_v54 = vpop.eup %3706 }
 0x42f   :  { %3434 = vmatmul.mubr.msk.bf16.vlgmr.msra.gmra.mrb[12].mxu0 %vm253_vm3, %v3266_v52  ;;  %v631_v55 = vsel %vm253_vm3, %v533_v53, 0  ;;  %v530_v56 = vmul.f32 %v3707_v54, %v3699_v37 }
 0x430   :  { %3444 = vmatpush3.bf16.xpose.msra.mxu0 %v631_v55  ;;  %3445 = vmatprep.mubr.msk.bf16.mxu0 %vm3942_vm0, %v3941_v0 }
 0x431   :  { %v534_v58 = vpack.c.bf16 %v530_v56, %v530_v56  ;;  %1406 = vst.msk [vmem:[#allocation11 + $0x18] sm:$0xff] %vm253_vm3, %v530_v56  ;;  %3455 = vmatprep.subr.bf16.mxu0 %v3941_v0 }
 0x433   :  { %3440 = vmatmul.mubr.msk.bf16.vlgmr.msra.gmra.mrb[8].mxu1 %vm253_vm3, %v3267_v57  ;;  %v677_v32 = vsel %vm253_vm3, %v534_v58, 0 }
 0x434   :  { %3450 = vmatpush3.bf16.xpose.msra.mxu1 %v677_v32  ;;  %3451 = vmatprep.mubr.msk.bf16.mxu1 %vm3942_vm0, %v3941_v0 }
 0x435   :  { %3463 = vmatprep.subr.bf16.mxu1 %v3941_v0 }
 0x437   :  { %3446 = vmatmul.mubr.msk.bf16.vlgmr.msra.gmra.mrb[16].mxu0 %vm253_vm3, %v3268_v59 }
 0x438   :  { %3459 = vmatprep.mubr.msk.bf16.mxu0 %vm3942_vm0, %v3941_v0  ;;  %3456 = vmatpush3.bf16.msra.mxu0 %v4197_v16 }
 0x439   :  { %3457 = vmatprep.subr.bf16.mxu0 %v3941_v0 }
 0x43b   :  { %3452 = vmatmul.mubr.msk.bf16.vlgmr.msra.gmra.mrb[12].mxu1 %vm253_vm3, %v3269_v33 }
 0x43c   :  { %3465 = vmatprep.mubr.msk.bf16.mxu1 %vm3942_vm0, %v3941_v0  ;;  %3458 = vmatpush3.bf16.msra.mxu0 %v4203_v18 }
 0x43d   :  { %3469 = vmatprep.subr.bf16.mxu0 %v3941_v0 }
 0x449   :  { %v806_v60 = vpop.trf.xlu1 }
 0x44a   :  { %v3270_v61 = vpack.c.bf16 %v806_v60, %v806_v60 }
 0x44c   :  { %862 = vxpose.xlu1.c.b16.start.end [1/1] (short) (narrow) %v3270_v61, 16 }
 0x44d   :  { %v807_v62 = vpop.trf.xlu1 }
 0x44e   :  { %v3271_v47 = vpack.c.bf16 %v807_v62, %v807_v62 }
 0x451   :  { %v808_v34 = vpop.trf.xlu1 }
 0x452   :  { %v3272_v14 = vpack.c.bf16 %v808_v34, %v808_v34 }
 0x455   :  { %v809_v63 = vpop.trf.xlu1 }
 0x456   :  { %v3273_v48 = vpack.c.bf16 %v809_v63, %v809_v63 }
 0x459   :  { %v810_v5 = vpop.trf.xlu1 }
 0x45a   :  { %v3274_v6 = vpack.c.bf16 %v810_v5, %v810_v5 }
 0x45c   :  { %v882_v11 = vsel %vm257_vm2, %v3274_v6, 0 }
 0x45d   :  { %3464 = vmatpush3.bf16.msra.mxu1 %v882_v11  ;;  %v811_v12 = vpop.trf.xlu1 }
 0x45e   :  { %3475 = vmatprep.subr.bf16.mxu1 %v3941_v0  ;;  %v3275_v1 = vpack.c.bf16 %v811_v12, %v811_v12 }
 0x460   :  { %v944_v2 = vsel %vm257_vm2, %v3275_v1, 0 }
 0x461   :  { %v812_v35 = vpop.trf.xlu1 }
 0x462   :  { %v3276_v21 = vpack.c.bf16 %v812_v35, %v812_v35 }
 0x464   :  { %v1006_v22 = vsel %vm257_vm2, %v3276_v21, 0 }
 0x465   :  { %v813_v13 = vpop.trf.xlu1 }
 0x466   :  { %v3277_v50 = vpack.c.bf16 %v813_v13, %v813_v13 }
 0x468   :  { %v1068_v52 = vsel %vm257_vm2, %v3277_v50, 0 }
 0x469   :  { %v4195_v15 = vpop.trf.xlu1 }
 0x46d   :  { %v4201_v17 = vpop.trf.xlu1 }
 0x471   :  { %v4207_v19 = vpop.trf.xlu1 }
 0x475   :  { %v4209_v20 = vpop.trf.xlu1 }
 0x4b2   :  { %v870_v23 = vpop.trf.xlu1 }
 0x4b3   :  { %3466 = vmatmul.mubr.msk.bf16.vlgmr.msra.gmra.mrb[16].mxu1 %vm253_vm3, %v870_v23 }
 0x4b4   :  { %3476 = vmatpush3.bf16.msra.mxu1 %v1006_v22  ;;  %3477 = vmatprep.mubr.msk.bf16.mxu1 %vm3942_vm0, %v3941_v0 }
 0x4b5   :  { %3487 = vmatprep.subr.bf16.mxu1 %v3941_v0 }
 0x502   :  { %v575_v24 = vpop.f32.mrb[12].mxu0 }
 0x503   :  { %v3435_v25 = vpop.f32.mrb[13].mxu0 }
 0x504   :  { %v578_v26 = vpop.f32.mrb[14].mxu0 }
 0x505   :  { %v3436_v27 = vpop.f32.mrb[15].mxu0 }
 0x506   :  { %v621_v28 = vpop.f32.mrb[8].mxu1 }
 0x507   :  { %v719_v29 = vpack.c.bf16 %v621_v28, %v575_v24  ;;  %v3441_v30 = vpop.f32.mrb[9].mxu1 }
 0x508   :  { %v624_v31 = vpop.f32.mrb[10].mxu1 }
 0x509   :  { %v3442_v36 = vpop.f32.mrb[11].mxu1  ;;  %721 = vxpose.xlu0.c.b16.start [1/2] (short) (narrow) %v719_v29, 16 }
 0x50a   :  { %v667_v37 = vpop.f32.mrb[16].mxu0 }
 0x50b   :  { %v3447_v38 = vpop.f32.mrb[17].mxu0 }
 0x50c   :  { %v670_v39 = vpop.f32.mrb[18].mxu0 }
 0x50d   :  { %v3448_v40 = vpop.f32.mrb[19].mxu0 }
 0x50e   :  { %v713_v41 = vpop.f32.mrb[12].mxu1 }
 0x50f   :  { %v720_v42 = vpack.c.bf16 %v713_v41, %v667_v37  ;;  %v3453_v43 = vpop.f32.mrb[13].mxu1 }
 0x510   :  { %v716_v45 = vpop.f32.mrb[14].mxu1 }
 0x511   :  { %v3454_v46 = vpop.f32.mrb[15].mxu1  ;;  %722 = vxpose.xlu0.c.b16.end [2/2] (short) (narrow) %v720_v42, 16 }
 0x515   :  { %924 = vxpose.xlu0.c.b16.start.end [1/1] (short) (narrow) %v3271_v47, 16 }
 0x519   :  { %986 = vxpose.xlu0.c.b16.start.end [1/1] (short) (narrow) %v3272_v14, 16 }
 0x51d   :  { %1048 = vxpose.xlu0.c.b16.start.end [1/1] (short) (narrow) %v3273_v48, 16 }
 0x573   :  { %v729_v49 = vpop.trf.xlu0 }
 0x574   :  { %3460 = vmatmul.mubr.msk.bf16.vlgmr.msra.gmra.mrb[20].mxu0 %vm120_vm1, %v729_v49 }
 0x575   :  { %3470 = vmatpush3.bf16.msra.mxu0 %v944_v2  ;;  %3471 = vmatprep.mubr.msk.bf16.mxu0 %vm3942_vm0, %v3941_v0 }
 0x576   :  { %3481 = vmatprep.subr.bf16.mxu0 %v3941_v0 }
 0x57b   :  { %v932_v51 = vpop.trf.xlu0 }
 0x57c   :  { %3472 = vmatmul.mubr.msk.bf16.vlgmr.msra.gmra.mrb[24].mxu0 %vm253_vm3, %v932_v51 }
 0x57d   :  { %3482 = vmatpush3.bf16.msra.mxu0 %v1068_v52  ;;  %3483 = vmatprep.mubr.msk.bf16.mxu0 %vm3942_vm0, %v3941_v0 }
 0x57e   :  { %3493 = vmatprep.subr.bf16.mxu0 %v3941_v0 }
 0x57f   :  { %v994_v53 = vpop.trf.xlu0 }
 0x580   :  { %3478 = vmatmul.mubr.msk.bf16.vlgmr.msra.gmra.mrb[20].mxu1 %vm253_vm3, %v994_v53 }
 0x581   :  { %3489 = vmatprep.mubr.msk.bf16.mxu1 %vm3942_vm0, %v3941_v0 }
 0x583   :  { %v1056_v54 = vpop.trf.xlu0 }
 0x584   :  { %3484 = vmatmul.mubr.msk.bf16.vlgmr.msra.gmra.mrb[28].mxu0 %vm253_vm3, %v1056_v54 }
 0x585   :  { %3495 = vmatprep.mubr.msk.bf16.mxu0 %vm3942_vm0, %v3941_v0 }
 0x586   :  { %v918_v55 = vpop.f32.mrb[16].mxu1 }
 0x587   :  { %v919_v56 = vadd.f32 %v918_v55, %v4141_v44  ;;  %v3467_v57 = vpop.f32.mrb[17].mxu1 }
 0x588   :  { %v921_v58 = vpop.f32.mrb[18].mxu1  ;;  %v3278_v57 = vpack.c.bf16 %v4195_v15, %v4195_v15 }
 0x589   :  { %v1110_v32 = vsel %vm253_vm3, %v919_v56, -inf  ;;  %v3468_v59 = vpop.f32.mrb[19].mxu1 }
 0x58a   :  { %1111 = vmax.xlane.f32.xlu0 %v1110_v32 }
 0x617   :  { %v1112_v33 = vpop.xlane.xlu0 %1111 }
 0x618   :  { %v1122_v61 = vsub.f32 %v919_v56, %v1112_v33 }
 0x61a   :  { %v1126_v5 = vmul.f32 1.442695, %v1122_v61 }
 0x61c   :  { %3708 = vpow2.f32 %v1126_v5 }
 0x626   :  { %v3709_v31 = vpop.eup %3708 }
 0x627   :  { %v1134_v39 = vsel %vm253_vm3, %v3709_v31, 0.0 }
 0x647   :  { %v4234_v60 = vpop.f32.mrb[20].mxu0 }
 0x648   :  { %v3461_v62 = vpop.f32.mrb[21].mxu0 }
 0x649   :  { %v787_v34 = vpop.f32.mrb[22].mxu0 }
 0x64a   :  { %v3462_v63 = vpop.f32.mrb[23].mxu0 }
 0x64f   :  { %v980_v6 = vpop.f32.mrb[24].mxu0 }
 0x650   :  { %v981_v11 = vadd.f32 %v980_v6, %v4141_v44  ;;  %v3473_v12 = vpop.f32.mrb[25].mxu0 }
 0x651   :  { %v983_v35 = vpop.f32.mrb[26].mxu0 }
 0x652   :  { %v3474_v13 = vpop.f32.mrb[27].mxu0  ;;  %v1113_v21 = vsel %vm253_vm3, %v981_v11, -inf }
 0x653   :  { %1114 = vmax.xlane.f32.xlu0 %v1113_v21  ;;  %v1042_v22 = vpop.f32.mrb[20].mxu1 }
 0x654   :  { %v1043_v23 = vadd.f32 %v1042_v22, %v4141_v44  ;;  %v3479_v24 = vpop.f32.mrb[21].mxu1 }
 0x655   :  { %v1045_v25 = vpop.f32.mrb[22].mxu1 }
 0x656   :  { %v3480_v26 = vpop.f32.mrb[23].mxu1  ;;  %v1116_v27 = vsel %vm253_vm3, %v1043_v23, -inf }
 0x657   :  { %1117 = vmax.xlane.f32.xlu0 %v1116_v27  ;;  %v1104_v28 = vpop.f32.mrb[28].mxu0 }
 0x658   :  { %v1105_v29 = vadd.f32 %v1104_v28, %v4141_v44  ;;  %v3485_v30 = vpop.f32.mrb[29].mxu0 }
 0x659   :  { %v1107_v36 = vpop.f32.mrb[30].mxu0 }
 0x65a   :  { %v3486_v37 = vpop.f32.mrb[31].mxu0  ;;  %v1119_v38 = vsel %vm253_vm3, %v1105_v29, -inf }
 0x65b   :  { %1120 = vmax.xlane.f32.xlu0 %v1119_v38 }
 0x65f   :  { %1135 = vadd.xlane.f32.xlu0 %v1134_v39 }
 0x6e0   :  { %v1115_v40 = vpop.xlane.xlu0 %1114 }
 0x6e1   :  { %v1123_v41 = vsub.f32 %v981_v11, %v1115_v40 }
 0x6e3   :  { %v1128_v42 = vmul.f32 1.442695, %v1123_v41 }
 0x6e4   :  { %v1118_v43 = vpop.xlane.xlu0 %1117 }
 0x6e5   :  { %3710 = vpow2.f32 %v1128_v42  ;;  %v1124_v45 = vsub.f32 %v1043_v23, %v1118_v43  ;;  %v3280_v23 = vpack.c.bf16 %v4207_v19, %v4207_v19 }
 0x6e7   :  { %v1130_v46 = vmul.f32 1.442695, %v1124_v45 }
 0x6e8   :  { %v1121_v47 = vpop.xlane.xlu0 %1120 }
 0x6e9   :  { %3712 = vpow2.f32 %v1130_v46  ;;  %v1125_v44 = vsub.f32 %v1105_v29, %v1121_v47 }
 0x6eb   :  { %v1132_v14 = vmul.f32 1.442695, %v1125_v44 }
 0x6ec   :  { %v1136_v48 = vpop.xlane.xlu0 %1135 }
 0x6ed   :  { %3714 = vpow2.f32 %v1132_v14 }
 0x6ee   :  { %3716 = vrcp.f32 %v1136_v48 }
 0x6ef   :  { %v3711_v1 = vpop.eup %3710 }
 0x6f0   :  { %v1137_v49 = vsel %vm253_vm3, %v3711_v1, 0.0 }
 0x6f1   :  { %1138 = vadd.xlane.f32.xlu0 %v1137_v49 }
 0x6f3   :  { %v3713_v2 = vpop.eup %3712 }
 0x6f4   :  { %v1140_v50 = vsel %vm253_vm3, %v3713_v2, 0.0 }
 0x6f5   :  { %1141 = vadd.xlane.f32.xlu0 %v1140_v50 }
 0x6f7   :  { %v3715_v51 = vpop.eup %3714 }
 0x6f8   :  { %v3717_v52 = vpop.eup %3716  ;;  %v1143_v53 = vsel %vm253_vm3, %v3715_v51, 0.0 }
 0x6f9   :  { %1144 = vadd.xlane.f32.xlu1 %v1143_v53  ;;  %v1150_v54 = vmul.f32 %v3717_v52, %v3709_v31 }
 0x6fb   :  { %v1154_v55 = vpack.c.bf16 %v1150_v54, %v1150_v54  ;;  %1407 = vst.msk [vmem:[#allocation11 + $0x20] sm:$0xff] %vm253_vm3, %v1150_v54 }
 0x6fd   :  { %v1162_v56 = vsel %vm253_vm3, %v1154_v55, 0 }
 0x6fe   :  { %3488 = vmatpush3.bf16.xpose.msra.mxu1 %v1162_v56 }
 0x6ff   :  { %3499 = vmatprep.subr.bf16.mxu1 %v3941_v0 }
 0x705   :  { %3490 = vmatmul.mubr.msk.bf16.vlgmr.msra.gmra.mrb[24].mxu1 %vm253_vm3, %v3278_v57  ;;  %v4298_v57 = vld [vmem:[#allocation5] sm:$0xff]  }
 0x706   :  { %3501 = vmatprep.mubr.msk.bf16.mxu1 %vm3942_vm0, %v3941_v0 }
 0x70a   :  { %744 = vrot.lane.b32.xlu1 %v4108_v10, %s3943_s0 }
 0x77e   :  { %v1139_v58 = vpop.xlane.xlu0 %1138 }
 0x77f   :  { %3718 = vrcp.f32 %v1139_v58  ;;  %v4301_v58 = vld [vmem:[#allocation5 + $0x8] sm:$0xff]  }
 0x782   :  { %v1142_v32 = vpop.xlane.xlu0 %1141 }
 0x783   :  { %3720 = vrcp.f32 %v1142_v32  ;;  %v96_v32 = vld [vmem:[%s4606_s1 + $0x8] sm:$0xff] }
 0x786   :  { %v1145_v59 = vpop.xlane.xlu1 %1144 }
 0x787   :  { %3722 = vrcp.f32 %v1145_v59 }
 0x789   :  { %v3719_v33 = vpop.eup %3718 }
 0x78a   :  { %v4256_v61 = vpop.permute.xlu1 %744  ;;  %v1151_v62 = vmul.f32 %v3719_v33, %v3711_v1 }
 0x78b   :  { %v785_v15 = vadd.f32 %v4234_v60, %v4256_v61 }
 0x78c   :  { %v1155_v34 = vpack.c.bf16 %v1151_v62, %v1151_v62  ;;  %1408 = vst.msk [vmem:[#allocation11 + $0x28] sm:$0xff] %vm253_vm3, %v1151_v62 }
 0x78d   :  { %v3721_v63 = vpop.eup %3720  ;;  %v1411_v5 = vadd.f32 %v785_v15, %v4084_v3  ;;  %v3279_v3 = vpack.c.bf16 %v4201_v17, %v4201_v17  ;;  %v3281_v17 = vpack.c.bf16 %v4209_v20, %v4209_v20 }
 0x78e   :  { %v1208_v10 = vsel %vm253_vm3, %v1155_v34, 0  ;;  %v1152_v6 = vmul.f32 %v3721_v63, %v3713_v2 }
 0x78f   :  { %3494 = vmatpush3.bf16.xpose.msra.mxu0 %v1208_v10  ;;  %v1413_v11 = vsel %vm120_vm1, %v1411_v5, 0.0 }
 0x790   :  { %1414 = vadd.xlane.f32.xlu1 %v1413_v11  ;;  %v1156_v12 = vpack.c.bf16 %v1152_v6, %v1152_v6  ;;  %1409 = vst.msk [vmem:[#allocation11 + $0x30] sm:$0xff] %vm253_vm3, %v1152_v6  ;;  %3505 = vmatprep.subr.bf16.mxu0 %v3941_v0 }
 0x791   :  { %v3723_v35 = vpop.eup %3722 }
 0x792   :  { %v1254_v60 = vsel %vm253_vm3, %v1156_v12, 0  ;;  %v1153_v13 = vmul.f32 %v3723_v35, %v3715_v51  ;;  %v1448_v12 = vsub.s32 5, %v4099_v7 }
 0x793   :  { %3500 = vmatpush3.bf16.xpose.msra.mxu1 %v1254_v60 }
 0x794   :  { %v1157_v21 = vpack.c.bf16 %v1153_v13, %v1153_v13  ;;  %1410 = vst.msk [vmem:[#allocation11 + $0x38] sm:$0xff] %vm253_vm3, %v1153_v13  ;;  %3511 = vmatprep.subr.bf16.mxu1 %v3941_v0 }
 0x796   :  { %3496 = vmatmul.mubr.msk.bf16.vlgmr.msra.gmra.mrb[32].mxu0 %vm253_vm3, %v3279_v3  ;;  %v1300_v22 = vsel %vm253_vm3, %v1157_v21, 0  ;;  %v1449_v3 = vrot.slane %v4104_v9, %v1448_v12 }
 0x797   :  { %3506 = vmatpush3.bf16.xpose.msra.mxu0 %v1300_v22  ;;  %3507 = vmatprep.mubr.msk.bf16.mxu0 %vm3942_vm0, %v3941_v0 }
 0x798   :  { %3519 = vmatprep.subr.bf16.mxu0 %v3941_v0 }
 0x79a   :  { %3502 = vmatmul.mubr.msk.bf16.vlgmr.msra.gmra.mrb[28].mxu1 %vm253_vm3, %v3280_v23 }
 0x79b   :  { %3512 = vmatpush3.bf16.msra.mxu1 %v4197_v16  ;;  %3515 = vmatprep.mubr.msk.bf16.mxu1 %vm3942_vm0, %v3941_v0 }
 0x79c   :  { %3513 = vmatprep.subr.bf16.mxu1 %v3941_v0 }
 0x79e   :  { %3508 = vmatmul.mubr.msk.bf16.vlgmr.msra.gmra.mrb[36].mxu0 %vm253_vm3, %v3281_v17 }
 0x79f   :  { %3514 = vmatpush3.bf16.msra.mxu1 %v4203_v18  ;;  %3523 = vmatprep.mubr.msk.bf16.mxu0 %vm3942_vm0, %v3941_v0 }
 0x7a0   :  { %3527 = vmatprep.subr.bf16.mxu1 %v3941_v0  ;;  %3520 = vmatpush3.bf16.msra.mxu0 %v4298_v57 }
 0x7a1   :  { %3521 = vmatprep.subr.bf16.mxu0 %v3941_v0 }
 0x7a4   :  { %3522 = vmatpush3.bf16.msra.mxu0 %v4301_v58 }
 0x7a5   :  { %3535 = vmatprep.subr.bf16.mxu0 %v3941_v0 }
 0x7d8   :  { %v1198_v19 = vpop.f32.mrb[24].mxu1 }
 0x7d9   :  { %v3491_v24 = vpop.f32.mrb[25].mxu1 }
 0x7da   :  { %v1201_v16 = vpop.f32.mrb[26].mxu1 }
 0x7db   :  { %v3492_v25 = vpop.f32.mrb[27].mxu1 }
 0x81d   :  { %v1415_v43 = vpop.xlane.xlu1 %1414 }
 0x81e   :  { %v1420_v45 = vmul.f32 0.03125, %v1415_v43 }
 0x820   :  { %v1422_v47 = vsub.f32 %v1411_v5, %v1420_v45  ;;  %v1442_v5 = vsub.s32 4, %v4099_v7 }
 0x822   :  { %v1424_v50 = vmul.f32 %v1422_v47, %v1422_v47  ;;  %v1443_v6 = vrot.slane %v4104_v9, %v1442_v5 }
 0x824   :  { %v1426_v51 = vsel %vm120_vm1, %v1424_v50, 0.0 }
 0x869   :  { %v1244_v26 = vpop.f32.mrb[32].mxu0 }
 0x86a   :  { %v1342_v27 = vpack.c.bf16 %v1244_v26, %v1198_v19  ;;  %v3497_v28 = vpop.f32.mrb[33].mxu0  ;;  %v4333_v19 = vsub.s32 1, %v4099_v7 }
 0x86b   :  { %v1247_v29 = vpop.f32.mrb[34].mxu0 }
 0x86c   :  { %1344 = vxpose.xlu0.c.b16.start [1/2] (short) (narrow) %v1342_v27, 16  ;;  %v3498_v20 = vpop.f32.mrb[35].mxu0  ;;  %v4337_v24 = vrot.slane %v4104_v9, %v4333_v19 }
 0x86d   :  { %v1290_v30 = vpop.f32.mrb[28].mxu1 }
 0x86e   :  { %v3503_v31 = vpop.f32.mrb[29].mxu1 }
 0x86f   :  { %v1293_v36 = vpop.f32.mrb[30].mxu1 }
 0x870   :  { %v3504_v37 = vpop.f32.mrb[31].mxu1 }
 0x871   :  { %v1336_v18 = vpop.f32.mrb[36].mxu0 }
 0x872   :  { %v1343_v38 = vpack.c.bf16 %v1336_v18, %v1290_v30  ;;  %v3509_v39 = vpop.f32.mrb[37].mxu0 }
 0x873   :  { %v1339_v40 = vpop.f32.mrb[38].mxu0 }
 0x874   :  { %v3510_v41 = vpop.f32.mrb[39].mxu0  ;;  %1345 = vxpose.xlu0.c.b16.end [2/2] (short) (narrow) %v1343_v38, 16 }
 0x8d6   :  { %v1352_v42 = vpop.trf.xlu0 }
 0x8d7   :  { %3516 = vmatmul.mubr.msk.bf16.vlgmr.msra.gmra.mrb[32].mxu1 %vm120_vm1, %v1352_v42 }
 0x8d8   :  { %3531 = vmatprep.mubr.msk.bf16.mxu1 %vm3942_vm0, %v3941_v0  ;;  %3528 = vmatpush3.bf16.msra.mxu1 %v4298_v57 }
 0x8d9   :  { %3529 = vmatprep.subr.bf16.mxu1 %v3941_v0 }
 0x8dc   :  { %3530 = vmatpush3.bf16.msra.mxu1 %v4301_v58 }
 0x8dd   :  { %3541 = vmatprep.subr.bf16.mxu1 %v3941_v0 }
 0x9aa   :  { %v1397_v46 = vpop.f32.mrb[32].mxu1 }
 0x9ab   :  { %v1398_v44 = vadd.f32 %v1397_v46, %v4256_v61  ;;  %v3517_v14 = vpop.f32.mrb[33].mxu1 }
 0x9ac   :  { %v1400_v48 = vpop.f32.mrb[34].mxu1 }
 0x9ad   :  { %v3518_v1 = vpop.f32.mrb[35].mxu1  ;;  %v1412_v49 = vadd.f32 %v1398_v44, %v4089_v4  ;;  %v95_v4 = vld [vmem:[%s4606_s1] sm:$0xff] }
 0x9ae   :  { %v1517_v59 = vpack.c.bf16 %v96_v32, %v95_v4 }
 0x9af   :  { %v1416_v2 = vsel %vm120_vm1, %v1412_v49, 0.0 }
 0x9b0   :  { %1417 = vadd.xlane.f32.xlu0 %v1416_v2  ;;  %3532 = vmatmul.mubr.msk.bf16.vlgmr.msra.gmra.mrb[36].mxu1 %vm120_vm1, %v1517_v59 }
 0x9b1   :  { %3543 = vmatprep.mubr.msk.bf16.mxu1 %vm3942_vm0, %v3941_v0 }
 0x9b4   :  { %1427 = vadd.xlane.f32.xlu0 %v1426_v51 }
 0xa3d   :  { %v1418_v52 = vpop.xlane.xlu0 %1417 }
 0xa3e   :  { %v1421_v53 = vmul.f32 0.03125, %v1418_v52 }
 0xa40   :  { %v1423_v54 = vsub.f32 %v1412_v49, %v1421_v53 }
 0xa41   :  { %v1428_v33 = vpop.xlane.xlu0 %1427 }
 0xa42   :  { %v1425_v55 = vmul.f32 %v1423_v54, %v1423_v54  ;;  %v1432_v61 = vmul.f32 0.03125, %v1428_v33 }
 0xa44   :  { %v1429_v56 = vsel %vm120_vm1, %v1425_v55, 0.0  ;;  %v1434_v62 = vadd.f32 1e-06, %v1432_v61 }
 0xa45   :  { %1430 = vadd.xlane.f32.xlu1 %v1429_v56 }
 0xa46   :  { %3724 = vrsqrt.f32 %v1434_v62 }
 0xa50   :  { %v3725_v10 = vpop.eup %3724 }
 0xa51   :  { %v1438_v11 = vmul.f32 %v3725_v10, %v1422_v47 }
 0xa53   :  { %v1444_v60 = vmul.f32 %v1443_v6, %v1438_v11 }
 0xa55   :  { %v4323_v22 = vadd.f32 %v1449_v3, %v1444_v60 }
 0xa83   :  { %v1555_v16 = vpop.f32.mrb[36].mxu1 }
 0xa84   :  { %v1556_v25 = vadd.f32 %v1555_v16, %v4337_v24  ;;  %v3533_v26 = vpop.f32.mrb[37].mxu1 }
 0xa85   :  { %v4340_v27 = vpop.f32.mrb[38].mxu1 }
 0xa86   :  { %v3534_v28 = vpop.f32.mrb[39].mxu1  ;;  %1596 = vxpose.xlu1.b32.start.end [1/1] (short) (narrow) %v1556_v25, 96 }
 0xad2   :  { %v1431_v15 = vpop.xlane.xlu1 %1430 }
 0xad3   :  { %v1433_v34 = vmul.f32 0.03125, %v1431_v15 }
 0xad5   :  { %v1435_v63 = vadd.f32 1e-06, %v1433_v34  ;;  %v4376_v34 = vld [vmem:[%s4608_s3] sm:$0x3] }
 0xad7   :  { %3726 = vrsqrt.f32 %v1435_v63  ;;  %v1669_v63 = vrot.slane %v4376_v34, %v4102_v8 }
 0xae1   :  { %v3727_v35 = vpop.eup %3726 }
 0xae2   :  { %v1439_v13 = vmul.f32 %v3727_v35, %v1423_v54 }
 0xae4   :  { %v1445_v21 = vmul.f32 %v1443_v6, %v1439_v13 }
 0xae6   :  { %v4325_v23 = vadd.f32 %v1449_v3, %v1445_v21 }
 0xae8   :  { %v1456_v17 = vpack.c.bf16 %v4325_v23, %v4323_v22 }
 0xaea   :  { %3524 = vmatmul.mubr.msk.bf16.vlgmr.msra.gmra.mrb[40].mxu0 %vm120_vm1, %v1456_v17 }
 0xaeb   :  { %3537 = vmatprep.mubr.msk.bf16.mxu0 %vm3942_vm0, %v3941_v0 }
 0xb06   :  { %v1612_v37 = vpop.trf.xlu1 }
 0xb0a   :  { %v1613_v18 = vpop.trf.xlu1 }
 0xb0e   :  { %v1614_v9 = vpop.trf.xlu1 }
 0xb12   :  { %v1615_v38 = vpop.trf.xlu1 }
 0xb16   :  { %v1616_v39 = vpop.trf.xlu1 }
 0xb17   :  { %v3286_v40 = vpack.c.bf16 %v1616_v39, %v1616_v39 }
 0xb19   :  { %v1690_v41 = vsel %vm257_vm2, %v3286_v40, 0 }
 0xb1a   :  { %3536 = vmatpush3.bf16.msra.mxu0 %v1690_v41  ;;  %v1617_v42 = vpop.trf.xlu1 }
 0xb1b   :  { %v3287_v43 = vpack.c.bf16 %v1617_v42, %v1617_v42  ;;  %3547 = vmatprep.subr.bf16.mxu0 %v3941_v0 }
 0xb1d   :  { %v1752_v45 = vsel %vm257_vm2, %v3287_v43, 0 }
 0xb1e   :  { %3542 = vmatpush3.bf16.msra.mxu1 %v1752_v45  ;;  %v1618_v50 = vpop.trf.xlu1 }
 0xb1f   :  { %3553 = vmatprep.subr.bf16.mxu1 %v3941_v0  ;;  %v3288_v55 = vpack.c.bf16 %v1618_v50, %v1618_v50 }
 0xb21   :  { %v1814_v32 = vsel %vm257_vm2, %v3288_v55, 0 }
 0xb22   :  { %v1619_v51 = vpop.trf.xlu1 }
 0xb23   :  { %v3289_v59 = vpack.c.bf16 %v1619_v51, %v1619_v51 }
 0xb25   :  { %v1876_v61 = vsel %vm257_vm2, %v3289_v59, 0 }
 0xb26   :  { %v4349_v52 = vpop.trf.xlu1 }
 0xb2a   :  { %v4351_v53 = vpop.trf.xlu1 }
 0xb2e   :  { %v4353_v54 = vpop.trf.xlu1 }
 0xb32   :  { %v4355_v56 = vpop.trf.xlu1 }
 0xbbd   :  { %v1510_v29 = vpop.f32.mrb[40].mxu0 }
 0xbbe   :  { %v1511_v20 = vadd.f32 %v1510_v29, %v4337_v24  ;;  %v3525_v30 = vpop.f32.mrb[41].mxu0 }
 0xbbf   :  { %v4343_v31 = vpop.f32.mrb[42].mxu0 }
 0xbc0   :  { %1562 = vxpose.xlu0.b32.start.end [1/1] (short) (narrow) %v1511_v20, 32  ;;  %v3526_v36 = vpop.f32.mrb[43].mxu0 }
 0xc40   :  { %v1578_v46 = vpop.trf.xlu0 }
 0xc41   :  { %v3282_v47 = vpack.c.bf16 %v1578_v46, %v1578_v46 }
 0xc43   :  { %1670 = vxpose.xlu0.c.b16.start.end [1/1] (short) (narrow) %v3282_v47, 16 }
 0xc44   :  { %v1579_v44 = vpop.trf.xlu0 }
 0xc45   :  { %v3283_v14 = vpack.c.bf16 %v1579_v44, %v1579_v44 }
 0xc47   :  { %1732 = vxpose.xlu1.c.b16.start.end [1/1] (short) (narrow) %v3283_v14, 16 }
 0xc48   :  { %v1580_v48 = vpop.trf.xlu0 }
 0xc49   :  { %v3284_v1 = vpack.c.bf16 %v1580_v48, %v1580_v48 }
 0xc4b   :  { %1794 = vxpose.xlu0.c.b16.start.end [1/1] (short) (narrow) %v3284_v1, 16 }
 0xc4c   :  { %v1581_v49 = vpop.trf.xlu0 }
 0xc4d   :  { %v3285_v2 = vpack.c.bf16 %v1581_v49, %v1581_v49 }
 0xc4f   :  { %1856 = vxpose.xlu0.c.b16.start.end [1/1] (short) (narrow) %v3285_v2, 16 }
 0xca9   :  { %v1678_v4 = vpop.trf.xlu0 }
 0xcaa   :  { %3538 = vmatmul.mubr.msk.bf16.vlgmr.msra.gmra.mrb[44].mxu0 %vm253_vm3, %v1678_v4 }
 0xcab   :  { %3548 = vmatpush3.bf16.msra.mxu0 %v1814_v32  ;;  %3549 = vmatprep.mubr.msk.bf16.mxu0 %vm3942_vm0, %v3941_v0 }
 0xcac   :  { %3559 = vmatprep.subr.bf16.mxu0 %v3941_v0 }
 0xcad   :  { %v1740_v33 = vpop.trf.xlu1 }
 0xcae   :  { %3544 = vmatmul.mubr.msk.bf16.vlgmr.msra.gmra.mrb[40].mxu1 %vm253_vm3, %v1740_v33 }
 0xcaf   :  { %3554 = vmatpush3.bf16.msra.mxu1 %v1876_v61  ;;  %3555 = vmatprep.mubr.msk.bf16.mxu1 %vm3942_vm0, %v3941_v0  ;;  %v1514_v61 = vadd.f32 %v4343_v31, %v4337_v24 }
 0xcb0   :  { %3565 = vmatprep.subr.bf16.mxu1 %v3941_v0 }
 0xcb1   :  { %v1802_v62 = vpop.trf.xlu0 }
 0xcb2   :  { %3550 = vmatmul.mubr.msk.bf16.vlgmr.msra.gmra.mrb[48].mxu0 %vm253_vm3, %v1802_v62  ;;  %v1559_v62 = vadd.f32 %v4340_v27, %v4337_v24 }
 0xcb3   :  { %3561 = vmatprep.mubr.msk.bf16.mxu0 %vm3942_vm0, %v3941_v0 }
 0xcb5   :  { %v1864_v15 = vpop.trf.xlu0 }
 0xcb6   :  { %3556 = vmatmul.mubr.msk.bf16.vlgmr.msra.gmra.mrb[44].mxu1 %vm253_vm3, %v1864_v15 }
 0xcb7   :  { %3567 = vmatprep.mubr.msk.bf16.mxu1 %vm3942_vm0, %v3941_v0 }
 0xd7d   :  { %v1726_v5 = vpop.f32.mrb[44].mxu0 }
 0xd7e   :  { %v1727_v10 = vadd.f32 %v1726_v5, %v1669_v63  ;;  %v3539_v6 = vpop.f32.mrb[45].mxu0 }
 0xd7f   :  { %v1729_v11 = vpop.f32.mrb[46].mxu0 }
 0xd80   :  { %v3540_v12 = vpop.f32.mrb[47].mxu0  ;;  %v1918_v35 = vsel %vm253_vm3, %v1727_v10, -inf }
 0xd81   :  { %1919 = vmax.xlane.f32.xlu0 %v1918_v35  ;;  %v1788_v60 = vpop.f32.mrb[40].mxu1 }
 0xd82   :  { %v1789_v13 = vadd.f32 %v1788_v60, %v1669_v63  ;;  %v3545_v3 = vpop.f32.mrb[41].mxu1 }
 0xd83   :  { %v1791_v21 = vpop.f32.mrb[42].mxu1  ;;  %v3290_v3 = vpack.c.bf16 %v4349_v52, %v4349_v52 }
 0xd84   :  { %v3546_v17 = vpop.f32.mrb[43].mxu1  ;;  %v1921_v16 = vsel %vm253_vm3, %v1789_v13, -inf }
 0xd85   :  { %v1850_v25 = vpop.f32.mrb[48].mxu0  ;;  %1922 = vmax.xlane.f32.xlu0 %v1921_v16 }
 0xd86   :  { %v1851_v26 = vadd.f32 %v1850_v25, %v1669_v63  ;;  %v3551_v28 = vpop.f32.mrb[49].mxu0 }
 0xd87   :  { %v1853_v29 = vpop.f32.mrb[50].mxu0 }
 0xd88   :  { %v3552_v20 = vpop.f32.mrb[51].mxu0  ;;  %v1924_v30 = vsel %vm253_vm3, %v1851_v26, -inf  ;;  %v3292_v29 = vpack.c.bf16 %v4353_v54, %v4353_v54 }
 0xd89   :  { %1925 = vmax.xlane.f32.xlu0 %v1924_v30  ;;  %v1912_v36 = vpop.f32.mrb[44].mxu1 }
 0xd8a   :  { %v1913_v37 = vadd.f32 %v1912_v36, %v1669_v63  ;;  %v3557_v18 = vpop.f32.mrb[45].mxu1 }
 0xd8b   :  { %v1915_v9 = vpop.f32.mrb[46].mxu1 }
 0xd8c   :  { %v3558_v38 = vpop.f32.mrb[47].mxu1  ;;  %v1927_v39 = vsel %vm253_vm3, %v1913_v37, -inf }
 0xd8d   :  { %1928 = vmax.xlane.f32.xlu0 %v1927_v39 }
 0xe0e   :  { %v1920_v40 = vpop.xlane.xlu0 %1919 }
 0xe0f   :  { %v1930_v41 = vsub.f32 %v1727_v10, %v1920_v40 }
 0xe11   :  { %v1934_v42 = vmul.f32 1.442695, %v1930_v41 }
 0xe12   :  { %v1923_v43 = vpop.xlane.xlu0 %1922 }
 0xe13   :  { %3728 = vpow2.f32 %v1934_v42  ;;  %v1931_v45 = vsub.f32 %v1789_v13, %v1923_v43 }
 0xe15   :  { %v1936_v46 = vmul.f32 1.442695, %v1931_v45 }
 0xe16   :  { %v1926_v47 = vpop.xlane.xlu0 %1925 }
 0xe17   :  { %3730 = vpow2.f32 %v1936_v46  ;;  %v1932_v44 = vsub.f32 %v1851_v26, %v1926_v47  ;;  %v3291_v26 = vpack.c.bf16 %v4351_v53, %v4351_v53  ;;  %v3293_v53 = vpack.c.bf16 %v4355_v56, %v4355_v56 }
 0xe19   :  { %v1938_v14 = vmul.f32 1.442695, %v1932_v44 }
 0xe1a   :  { %v1929_v48 = vpop.xlane.xlu0 %1928 }
 0xe1b   :  { %3732 = vpow2.f32 %v1938_v14  ;;  %v1933_v1 = vsub.f32 %v1913_v37, %v1929_v48 }
 0xe1d   :  { %v3729_v49 = vpop.eup %3728  ;;  %v1940_v2 = vmul.f32 1.442695, %v1933_v1 }
 0xe1e   :  { %v1942_v50 = vsel %vm253_vm3, %v3729_v49, 0.0 }
 0xe1f   :  { %3734 = vpow2.f32 %v1940_v2  ;;  %1943 = vadd.xlane.f32.xlu0 %v1942_v50 }
 0xe21   :  { %v3731_v51 = vpop.eup %3730 }
 0xe22   :  { %v1945_v55 = vsel %vm253_vm3, %v3731_v51, 0.0 }
 0xe23   :  { %1946 = vadd.xlane.f32.xlu1 %v1945_v55 }
 0xe25   :  { %v3733_v4 = vpop.eup %3732 }
 0xe26   :  { %v1948_v32 = vsel %vm253_vm3, %v3733_v4, 0.0 }
 0xe27   :  { %1949 = vadd.xlane.f32.xlu0 %v1948_v32 }
 0xe29   :  { %v3735_v59 = vpop.eup %3734 }
 0xe2a   :  { %v1951_v33 = vsel %vm253_vm3, %v3735_v59, 0.0 }
 0xe2b   :  { %1952 = vadd.xlane.f32.xlu0 %v1951_v33 }
 0xe34   :  { %2168 = vrot.lane.b32.xlu1 %v4298_v57, %s3943_s0 }
 0xe38   :  { %2170 = vrot.lane.b32.xlu1 %v4301_v58, %s3943_s0 }
 0xe58   :  { %2221 = vxpose.xlu0.b32.start.end [1/1] (short) (narrow) %v1514_v61, 32 }
 0xe61   :  { %2255 = vxpose.xlu1.b32.start.end [1/1] (short) (narrow) %v1559_v62, 96 }
 0xeac   :  { %v1944_v15 = vpop.xlane.xlu0 %1943 }
 0xead   :  { %3736 = vrcp.f32 %v1944_v15 }
 0xeb0   :  { %v1947_v63 = vpop.xlane.xlu1 %1946 }
 0xeb1   :  { %3738 = vrcp.f32 %v1947_v63 }
 0xeb4   :  { %v1950_v5 = vpop.xlane.xlu0 %1949  ;;  %v4419_v20 = vpop.permute.xlu1 %2168 }
 0xeb5   :  { %3740 = vrcp.f32 %v1950_v5 }
 0xeb7   :  { %v3737_v10 = vpop.eup %3736 }
 0xeb8   :  { %v1953_v6 = vpop.xlane.xlu0 %1952  ;;  %v1958_v57 = vmul.f32 %v3737_v10, %v3729_v49  ;;  %v4430_v30 = vpop.permute.xlu1 %2170 }
 0xeb9   :  { %3742 = vrcp.f32 %v1953_v6 }
 0xeba   :  { %v1962_v11 = vpack.c.bf16 %v1958_v57, %v1958_v57  ;;  %2870 = vst.msk [vmem:[#allocation13] sm:$0xff] %vm253_vm3, %v1958_v57 }
 0xebb   :  { %v3739_v58 = vpop.eup %3738 }
 0xebc   :  { %v1970_v31 = vsel %vm253_vm3, %v1962_v11, 0  ;;  %v1959_v12 = vmul.f32 %v3739_v58, %v3731_v51 }
 0xebd   :  { %3560 = vmatpush3.bf16.xpose.msra.mxu0 %v1970_v31 }
 0xebe   :  { %v1963_v27 = vpack.c.bf16 %v1959_v12, %v1959_v12  ;;  %2871 = vst.msk [vmem:[#allocation13 + $0x8] sm:$0xff] %vm253_vm3, %v1959_v12  ;;  %3571 = vmatprep.subr.bf16.mxu0 %v3941_v0 }
 0xebf   :  { %v3741_v35 = vpop.eup %3740 }
 0xec0   :  { %v2016_v60 = vsel %vm253_vm3, %v1963_v27, 0  ;;  %v1960_v13 = vmul.f32 %v3741_v35, %v3733_v4 }
 0xec1   :  { %3566 = vmatpush3.bf16.xpose.msra.mxu1 %v2016_v60 }
 0xec2   :  { %v1964_v21 = vpack.c.bf16 %v1960_v13, %v1960_v13  ;;  %2872 = vst.msk [vmem:[#allocation13 + $0x10] sm:$0xff] %vm253_vm3, %v1960_v13  ;;  %3577 = vmatprep.subr.bf16.mxu1 %v3941_v0 }
 0xec3   :  { %v3743_v17 = vpop.eup %3742 }
 0xec4   :  { %3562 = vmatmul.mubr.msk.bf16.vlgmr.msra.gmra.mrb[52].mxu0 %vm253_vm3, %v3290_v3  ;;  %v2062_v16 = vsel %vm253_vm3, %v1964_v21, 0  ;;  %v1961_v25 = vmul.f32 %v3743_v17, %v3735_v59 }
 0xec5   :  { %3572 = vmatpush3.bf16.xpose.msra.mxu0 %v2062_v16  ;;  %3573 = vmatprep.mubr.msk.bf16.mxu0 %vm3942_vm0, %v3941_v0 }
 0xec6   :  { %v1965_v28 = vpack.c.bf16 %v1961_v25, %v1961_v25  ;;  %2873 = vst.msk [vmem:[#allocation13 + $0x18] sm:$0xff] %vm253_vm3, %v1961_v25  ;;  %3583 = vmatprep.subr.bf16.mxu0 %v3941_v0 }
 0xec8   :  { %3568 = vmatmul.mubr.msk.bf16.vlgmr.msra.gmra.mrb[48].mxu1 %vm253_vm3, %v3291_v26  ;;  %v2108_v52 = vsel %vm253_vm3, %v1965_v28, 0  ;;  %v2328_v26 = vrot.slane %v4376_v34, %v4333_v19 }
 0xec9   :  { %3578 = vmatpush3.bf16.xpose.msra.mxu1 %v2108_v52  ;;  %3579 = vmatprep.mubr.msk.bf16.mxu1 %vm3942_vm0, %v3941_v0 }
 0xeca   :  { %3591 = vmatprep.subr.bf16.mxu1 %v3941_v0 }
 0xecc   :  { %3574 = vmatmul.mubr.msk.bf16.vlgmr.msra.gmra.mrb[56].mxu0 %vm253_vm3, %v3292_v29 }
 0xecd   :  { %3584 = vmatpush3.bf16.msra.mxu0 %v4419_v20  ;;  %3587 = vmatprep.mubr.msk.bf16.mxu0 %vm3942_vm0, %v3941_v0 }
 0xece   :  { %3585 = vmatprep.subr.bf16.mxu0 %v3941_v0 }
 0xed0   :  { %3580 = vmatmul.mubr.msk.bf16.vlgmr.msra.gmra.mrb[52].mxu1 %vm253_vm3, %v3293_v53 }
 0xed1   :  { %3593 = vmatprep.mubr.msk.bf16.mxu1 %vm3942_vm0, %v3941_v0  ;;  %3586 = vmatpush3.bf16.msra.mxu0 %v4430_v30 }
 0xed2   :  { %3597 = vmatprep.subr.bf16.mxu0 %v3941_v0 }
 0xed8   :  { %v2237_v54 = vpop.trf.xlu0 }
 0xed9   :  { %v3294_v36 = vpack.c.bf16 %v2237_v54, %v2237_v54 }
 0xedb   :  { %2329 = vxpose.xlu1.c.b16.start.end [1/1] (short) (narrow) %v3294_v36, 16 }
 0xedc   :  { %v2238_v62 = vpop.trf.xlu0 }
 0xedd   :  { %v3295_v12 = vpack.c.bf16 %v2238_v62, %v2238_v62 }
 0xee0   :  { %v2239_v58 = vpop.trf.xlu0 }
 0xee1   :  { %v2271_v37 = vpop.trf.xlu1  ;;  %v3296_v27 = vpack.c.bf16 %v2239_v58, %v2239_v58 }
 0xee4   :  { %v2240_v35 = vpop.trf.xlu0 }
 0xee5   :  { %v2272_v18 = vpop.trf.xlu1  ;;  %v3297_v60 = vpack.c.bf16 %v2240_v35, %v2240_v35 }
 0xee9   :  { %v2273_v9 = vpop.trf.xlu1 }
 0xeed   :  { %v2274_v56 = vpop.trf.xlu1 }
 0xef1   :  { %v2275_v38 = vpop.trf.xlu1 }
 0xef2   :  { %v3298_v39 = vpack.c.bf16 %v2275_v38, %v2275_v38 }
 0xef4   :  { %v2349_v40 = vsel %vm257_vm2, %v3298_v39, 0 }
 0xef5   :  { %3592 = vmatpush3.bf16.msra.mxu1 %v2349_v40  ;;  %v2276_v41 = vpop.trf.xlu1 }
 0xef6   :  { %3603 = vmatprep.subr.bf16.mxu1 %v3941_v0  ;;  %v3299_v13 = vpack.c.bf16 %v2276_v41, %v2276_v41 }
 0xef8   :  { %v2411_v21 = vsel %vm257_vm2, %v3299_v13, 0 }
 0xef9   :  { %v2277_v42 = vpop.trf.xlu1 }
 0xefa   :  { %v3300_v14 = vpack.c.bf16 %v2277_v42, %v2277_v42 }
 0xefc   :  { %v2473_v48 = vsel %vm257_vm2, %v3300_v14, 0 }
 0xefd   :  { %v2278_v43 = vpop.trf.xlu1 }
 0xefe   :  { %v3301_v17 = vpack.c.bf16 %v2278_v43, %v2278_v43 }
 0xf00   :  { %v2535_v25 = vsel %vm257_vm2, %v3301_v17, 0 }
 0xf01   :  { %v4438_v45 = vpop.trf.xlu1 }
 0xf05   :  { %v4440_v46 = vpop.trf.xlu1 }
 0xf09   :  { %v4442_v47 = vpop.trf.xlu1 }
 0xf0d   :  { %v4444_v44 = vpop.trf.xlu1 }
 0xf41   :  { %v2337_v1 = vpop.trf.xlu1 }
 0xf42   :  { %3594 = vmatmul.mubr.msk.bf16.vlgmr.msra.gmra.mrb[56].mxu1 %vm253_vm3, %v2337_v1 }
 0xf43   :  { %3604 = vmatpush3.bf16.msra.mxu1 %v2473_v48  ;;  %3605 = vmatprep.mubr.msk.bf16.mxu1 %vm3942_vm0, %v3941_v0 }
 0xf44   :  { %3615 = vmatprep.subr.bf16.mxu1 %v3941_v0 }
 0xf97   :  { %v2006_v49 = vpop.f32.mrb[52].mxu0 }
 0xf98   :  { %v3563_v2 = vpop.f32.mrb[53].mxu0 }
 0xf99   :  { %v2009_v50 = vpop.f32.mrb[54].mxu0 }
 0xf9a   :  { %v3564_v51 = vpop.f32.mrb[55].mxu0 }
 0xf9b   :  { %v2052_v55 = vpop.f32.mrb[48].mxu1 }
 0xf9c   :  { %v2150_v4 = vpack.c.bf16 %v2052_v55, %v2006_v49  ;;  %v3569_v32 = vpop.f32.mrb[49].mxu1 }
 0xf9d   :  { %v2055_v59 = vpop.f32.mrb[50].mxu1 }
 0xf9e   :  { %2152 = vxpose.xlu0.c.b16.start [1/2] (short) (narrow) %v2150_v4, 16  ;;  %v3570_v33 = vpop.f32.mrb[51].mxu1 }
 0xf9f   :  { %v2098_v61 = vpop.f32.mrb[56].mxu0 }
 0xfa0   :  { %v3575_v15 = vpop.f32.mrb[57].mxu0 }
 0xfa1   :  { %v2101_v63 = vpop.f32.mrb[58].mxu0 }
 0xfa2   :  { %v3576_v5 = vpop.f32.mrb[59].mxu0 }
 0xfa3   :  { %v2144_v10 = vpop.f32.mrb[52].mxu1 }
 0xfa4   :  { %v2151_v6 = vpack.c.bf16 %v2144_v10, %v2098_v61  ;;  %v3581_v57 = vpop.f32.mrb[53].mxu1 }
 0xfa5   :  { %v2147_v11 = vpop.f32.mrb[54].mxu1 }
 0xfa6   :  { %2153 = vxpose.xlu0.c.b16.end [2/2] (short) (narrow) %v2151_v6, 16  ;;  %v3582_v31 = vpop.f32.mrb[55].mxu1 }
 0xfaa   :  { %2391 = vxpose.xlu0.c.b16.start.end [1/1] (short) (narrow) %v3295_v12, 16 }
 0xfae   :  { %2453 = vxpose.xlu0.c.b16.start.end [1/1] (short) (narrow) %v3296_v27, 16 }
 0xfb2   :  { %2515 = vxpose.xlu0.c.b16.start.end [1/1] (short) (narrow) %v3297_v60, 16 }
0x1008   :  { %v2160_v3 = vpop.trf.xlu0 }
0x1009   :  { %3588 = vmatmul.mubr.msk.bf16.vlgmr.msra.gmra.mrb[60].mxu0 %vm120_vm1, %v2160_v3 }
0x100a   :  { %3598 = vmatpush3.bf16.msra.mxu0 %v2411_v21  ;;  %3599 = vmatprep.mubr.msk.bf16.mxu0 %vm3942_vm0, %v3941_v0 }
0x100b   :  { %3609 = vmatprep.subr.bf16.mxu0 %v3941_v0 }
0x1010   :  { %v2399_v16 = vpop.trf.xlu0 }
0x1011   :  { %3600 = vmatmul.mubr.msk.bf16.vlgmr.msra.gmra.mrb[64].mxu0 %vm253_vm3, %v2399_v16 }
0x1012   :  { %3610 = vmatpush3.bf16.msra.mxu0 %v2535_v25  ;;  %3611 = vmatprep.mubr.msk.bf16.mxu0 %vm3942_vm0, %v3941_v0 }
0x1013   :  { %3621 = vmatprep.subr.bf16.mxu0 %v3941_v0 }
0x1014   :  { %v2461_v28 = vpop.trf.xlu0 }
0x1015   :  { %3606 = vmatmul.mubr.msk.bf16.vlgmr.msra.gmra.mrb[60].mxu1 %vm253_vm3, %v2461_v28  ;;  %v2385_v52 = vpop.f32.mrb[56].mxu1 }
0x1016   :  { %v2386_v29 = vadd.f32 %v2385_v52, %v2328_v26  ;;  %v3595_v53 = vpop.f32.mrb[57].mxu1  ;;  %3617 = vmatprep.mubr.msk.bf16.mxu1 %vm3942_vm0, %v3941_v0 }
0x1017   :  { %v2388_v54 = vpop.f32.mrb[58].mxu1 }
0x1018   :  { %v2523_v36 = vpop.trf.xlu0  ;;  %v2577_v37 = vsel %vm253_vm3, %v2386_v29, -inf  ;;  %v3596_v18 = vpop.f32.mrb[59].mxu1  ;;  %v3302_v54 = vpack.c.bf16 %v4438_v45, %v4438_v45 }
0x1019   :  { %3612 = vmatmul.mubr.msk.bf16.vlgmr.msra.gmra.mrb[68].mxu0 %vm253_vm3, %v2523_v36  ;;  %2578 = vmax.xlane.f32.xlu0 %v2577_v37 }
0x101a   :  { %3623 = vmatprep.mubr.msk.bf16.mxu0 %vm3942_vm0, %v3941_v0 }
0x10a6   :  { %v2579_v34 = vpop.xlane.xlu0 %2578 }
0x10a7   :  { %v2589_v56 = vsub.f32 %v2386_v29, %v2579_v34 }
0x10a9   :  { %v2593_v41 = vmul.f32 1.442695, %v2589_v56 }
0x10ab   :  { %3744 = vpow2.f32 %v2593_v41 }
0x10b5   :  { %v3745_v62 = vpop.eup %3744 }
0x10b6   :  { %v2601_v10 = vsel %vm253_vm3, %v3745_v62, 0.0 }
0x10dc   :  { %v4470_v9 = vpop.f32.mrb[60].mxu0 }
0x10dd   :  { %v3589_v38 = vpop.f32.mrb[61].mxu0 }
0x10de   :  { %v2218_v39 = vpop.f32.mrb[62].mxu0 }
0x10df   :  { %v3590_v40 = vpop.f32.mrb[63].mxu0 }
0x10e4   :  { %v2447_v42 = vpop.f32.mrb[64].mxu0 }
0x10e5   :  { %v2448_v43 = vadd.f32 %v2447_v42, %v2328_v26  ;;  %v3601_v14 = vpop.f32.mrb[65].mxu0 }
0x10e6   :  { %v2450_v48 = vpop.f32.mrb[66].mxu0 }
0x10e7   :  { %v3602_v1 = vpop.f32.mrb[67].mxu0  ;;  %v2580_v49 = vsel %vm253_vm3, %v2448_v43, -inf }
0x10e8   :  { %2581 = vmax.xlane.f32.xlu0 %v2580_v49  ;;  %v2509_v2 = vpop.f32.mrb[60].mxu1  ;;  %v3303_v1 = vpack.c.bf16 %v4440_v46, %v4440_v46  ;;  %v3305_v46 = vpack.c.bf16 %v4444_v44, %v4444_v44 }
0x10e9   :  { %v2510_v50 = vadd.f32 %v2509_v2, %v2328_v26  ;;  %v3607_v51 = vpop.f32.mrb[61].mxu1 }
0x10ea   :  { %v2512_v55 = vpop.f32.mrb[62].mxu1 }
0x10eb   :  { %v3608_v4 = vpop.f32.mrb[63].mxu1  ;;  %v2583_v32 = vsel %vm253_vm3, %v2510_v50, -inf }
0x10ec   :  { %v2571_v59 = vpop.f32.mrb[68].mxu0  ;;  %2584 = vmax.xlane.f32.xlu0 %v2583_v32 }
0x10ed   :  { %v2572_v33 = vadd.f32 %v2571_v59, %v2328_v26  ;;  %v3613_v61 = vpop.f32.mrb[69].mxu0 }
0x10ee   :  { %v2574_v15 = vpop.f32.mrb[70].mxu0 }
0x10ef   :  { %v3614_v63 = vpop.f32.mrb[71].mxu0  ;;  %v2586_v5 = vsel %vm253_vm3, %v2572_v33, -inf }
0x10f0   :  { %2587 = vmax.xlane.f32.xlu0 %v2586_v5 }
0x10f4   :  { %2602 = vadd.xlane.f32.xlu0 %v2601_v10 }
0x1175   :  { %v2582_v6 = vpop.xlane.xlu0 %2581 }
0x1176   :  { %v2590_v57 = vsub.f32 %v2448_v43, %v2582_v6 }
0x1178   :  { %v2595_v11 = vmul.f32 1.442695, %v2590_v57 }
0x1179   :  { %v2585_v58 = vpop.xlane.xlu0 %2584 }
0x117a   :  { %3746 = vpow2.f32 %v2595_v11  ;;  %v2591_v31 = vsub.f32 %v2510_v50, %v2585_v58  ;;  %v3304_v50 = vpack.c.bf16 %v4442_v47, %v4442_v47 }
0x117c   :  { %v2597_v12 = vmul.f32 1.442695, %v2591_v31 }
0x117d   :  { %v2588_v27 = vpop.xlane.xlu0 %2587 }
0x117e   :  { %3748 = vpow2.f32 %v2597_v12  ;;  %v2592_v35 = vsub.f32 %v2572_v33, %v2588_v27 }
0x1180   :  { %v2599_v60 = vmul.f32 1.442695, %v2592_v35 }
0x1181   :  { %v2603_v13 = vpop.xlane.xlu0 %2602 }
0x1182   :  { %3750 = vpow2.f32 %v2599_v60 }
0x1183   :  { %3752 = vrcp.f32 %v2603_v13 }
0x1184   :  { %v3747_v3 = vpop.eup %3746 }
0x1185   :  { %v2604_v21 = vsel %vm253_vm3, %v3747_v3, 0.0 }
0x1186   :  { %2605 = vadd.xlane.f32.xlu0 %v2604_v21 }
0x1188   :  { %v3749_v17 = vpop.eup %3748 }
0x1189   :  { %v2607_v16 = vsel %vm253_vm3, %v3749_v17, 0.0 }
0x118a   :  { %2608 = vadd.xlane.f32.xlu1 %v2607_v16 }
0x118c   :  { %v3751_v25 = vpop.eup %3750 }
0x118d   :  { %v3753_v26 = vpop.eup %3752  ;;  %v2610_v28 = vsel %vm253_vm3, %v3751_v25, 0.0 }
0x118e   :  { %2611 = vadd.xlane.f32.xlu0 %v2610_v28  ;;  %v2617_v52 = vmul.f32 %v3753_v26, %v3745_v62 }
0x1190   :  { %v2621_v29 = vpack.c.bf16 %v2617_v52, %v2617_v52  ;;  %2874 = vst.msk [vmem:[#allocation13 + $0x20] sm:$0xff] %vm253_vm3, %v2617_v52 }
0x1192   :  { %v2629_v53 = vsel %vm253_vm3, %v2621_v29, 0 }
0x1193   :  { %3616 = vmatpush3.bf16.xpose.msra.mxu1 %v2629_v53 }
0x1194   :  { %3627 = vmatprep.subr.bf16.mxu1 %v3941_v0 }
0x119a   :  { %3618 = vmatmul.mubr.msk.bf16.vlgmr.msra.gmra.mrb[64].mxu1 %vm253_vm3, %v3302_v54  ;;  %v3686_v54 = vld [vmem:[#allocation7] sm:$0xff]  }
0x119b   :  { %2175 = vrot.lane.b32.xlu1 %v4337_v24, %s3943_s0  ;;  %3629 = vmatprep.mubr.msk.bf16.mxu1 %vm3942_vm0, %v3941_v0 }
0x1213   :  { %v2606_v36 = vpop.xlane.xlu0 %2605 }
0x1214   :  { %3754 = vrcp.f32 %v2606_v36  ;;  %v3687_v36 = vld [vmem:[#allocation7 + $0x8] sm:$0xff]  }
0x1217   :  { %v2609_v37 = vpop.xlane.xlu1 %2608 }
0x1218   :  { %3756 = vrcp.f32 %v2609_v37  ;;  %v3689_v37 = vld [vmem:[%s4612_s7 + $0x8] sm:$0xff]  }
0x121b   :  { %v4489_v18 = vpop.permute.xlu1 %2175  ;;  %v2612_v34 = vpop.xlane.xlu0 %2611 }
0x121c   :  { %v2216_v56 = vadd.f32 %v4470_v9, %v4489_v18  ;;  %3758 = vrcp.f32 %v2612_v34 }
0x121e   :  { %v3755_v45 = vpop.eup %3754  ;;  %v2878_v38 = vadd.f32 %v2216_v56, %v4323_v22 }
0x121f   :  { %v2618_v39 = vmul.f32 %v3755_v45, %v3747_v3 }
0x1220   :  { %v2880_v24 = vsel %vm120_vm1, %v2878_v38, 0.0 }
0x1221   :  { %2881 = vadd.xlane.f32.xlu1 %v2880_v24  ;;  %v2622_v40 = vpack.c.bf16 %v2618_v39, %v2618_v39  ;;  %2875 = vst.msk [vmem:[#allocation13 + $0x28] sm:$0xff] %vm253_vm3, %v2618_v39  ;;  %v2908_v24 = vsub.s32 6, %v4099_v7 }
0x1222   :  { %v3757_v41 = vpop.eup %3756 }
0x1223   :  { %v2675_v42 = vsel %vm253_vm3, %v2622_v40, 0  ;;  %v2619_v43 = vmul.f32 %v3757_v41, %v3749_v17  ;;  %v3768_v41 = vld [vmem:[#allocation8] sm:$0xff] }
0x1224   :  { %3622 = vmatpush3.bf16.xpose.msra.mxu0 %v2675_v42  ;;  %v2909_v42 = vrot.slane %v3768_v41, %v2908_v24 }
0x1225   :  { %v2623_v14 = vpack.c.bf16 %v2619_v43, %v2619_v43  ;;  %2876 = vst.msk [vmem:[#allocation13 + $0x30] sm:$0xff] %vm253_vm3, %v2619_v43  ;;  %3633 = vmatprep.subr.bf16.mxu0 %v3941_v0 }
0x1226   :  { %v3759_v9 = vpop.eup %3758 }
0x1227   :  { %v2721_v22 = vsel %vm253_vm3, %v2623_v14, 0  ;;  %v2620_v48 = vmul.f32 %v3759_v9, %v3751_v25  ;;  %v2914_v14 = vsub.s32 7, %v4099_v7 }
0x1228   :  { %3628 = vmatpush3.bf16.xpose.msra.mxu1 %v2721_v22 }
0x1229   :  { %v2624_v49 = vpack.c.bf16 %v2620_v48, %v2620_v48  ;;  %2877 = vst.msk [vmem:[#allocation13 + $0x38] sm:$0xff] %vm253_vm3, %v2620_v48  ;;  %3639 = vmatprep.subr.bf16.mxu1 %v3941_v0 }
0x122b   :  { %3624 = vmatmul.mubr.msk.bf16.vlgmr.msra.gmra.mrb[72].mxu0 %vm253_vm3, %v3303_v1  ;;  %v2767_v2 = vsel %vm253_vm3, %v2624_v49, 0  ;;  %v2915_v1 = vrot.slane %v3768_v41, %v2914_v14 }
0x122c   :  { %3634 = vmatpush3.bf16.xpose.msra.mxu0 %v2767_v2  ;;  %3635 = vmatprep.mubr.msk.bf16.mxu0 %vm3942_vm0, %v3941_v0 }
0x122d   :  { %3647 = vmatprep.subr.bf16.mxu0 %v3941_v0 }
0x122f   :  { %3630 = vmatmul.mubr.msk.bf16.vlgmr.msra.gmra.mrb[68].mxu1 %vm253_vm3, %v3304_v50 }
0x1230   :  { %3640 = vmatpush3.bf16.msra.mxu1 %v4419_v20  ;;  %3643 = vmatprep.mubr.msk.bf16.mxu1 %vm3942_vm0, %v3941_v0 }
0x1231   :  { %3641 = vmatprep.subr.bf16.mxu1 %v3941_v0 }
0x1233   :  { %3636 = vmatmul.mubr.msk.bf16.vlgmr.msra.gmra.mrb[76].mxu0 %vm253_vm3, %v3305_v46 }
0x1234   :  { %3642 = vmatpush3.bf16.msra.mxu1 %v4430_v30  ;;  %3651 = vmatprep.mubr.msk.bf16.mxu0 %vm3942_vm0, %v3941_v0 }
0x1235   :  { %3655 = vmatprep.subr.bf16.mxu1 %v3941_v0  ;;  %3648 = vmatpush3.bf16.msra.mxu0 %v3686_v54 }
0x1236   :  { %3649 = vmatprep.subr.bf16.mxu0 %v3941_v0 }
0x1239   :  { %3650 = vmatpush3.bf16.msra.mxu0 %v3687_v36 }
0x126d   :  { %v2665_v47 = vpop.f32.mrb[64].mxu1 }
0x126e   :  { %v3619_v51 = vpop.f32.mrb[65].mxu1 }
0x126f   :  { %v2668_v20 = vpop.f32.mrb[66].mxu1  ;;  %v3691_v51 = vld [vmem:[%s4612_s7 + $0x18] sm:$0xff]  }
0x1270   :  { %v3620_v55 = vpop.f32.mrb[67].mxu1  ;;  %v2925_v20 = vsub.s32 2, %v4099_v7 }
0x1272   :  { %v2926_v55 = vrot.slane %v3768_v41, %v2925_v20 }
0x12ae   :  { %v2882_v4 = vpop.xlane.xlu1 %2881 }
0x12af   :  { %v2886_v32 = vmul.f32 0.03125, %v2882_v4 }
0x12b1   :  { %v2888_v59 = vsub.f32 %v2878_v38, %v2886_v32 }
0x12b3   :  { %v2890_v33 = vmul.f32 %v2888_v59, %v2888_v59 }
0x12b5   :  { %v2892_v44 = vsel %vm120_vm1, %v2890_v33, 0.0 }
0x12b6   :  { %2893 = vadd.xlane.f32.xlu1 %v2892_v44 }
0x12fe   :  { %v2711_v61 = vpop.f32.mrb[72].mxu0 }
0x12ff   :  { %v2809_v62 = vpack.c.bf16 %v2711_v61, %v2665_v47  ;;  %v3625_v15 = vpop.f32.mrb[73].mxu0  ;;  %v3690_v47 = vld [vmem:[%s4612_s7 + $0x10] sm:$0xff]  }
0x1300   :  { %v2714_v30 = vpop.f32.mrb[74].mxu0 }
0x1301   :  { %v3626_v63 = vpop.f32.mrb[75].mxu0  ;;  %2811 = vxpose.xlu0.c.b16.start [1/2] (short) (narrow) %v2809_v62, 16 }
0x1302   :  { %v2757_v5 = vpop.f32.mrb[68].mxu1 }
0x1303   :  { %v3631_v10 = vpop.f32.mrb[69].mxu1 }
0x1304   :  { %v2760_v6 = vpop.f32.mrb[70].mxu1 }
0x1305   :  { %v3632_v57 = vpop.f32.mrb[71].mxu1 }
0x1306   :  { %v2803_v11 = vpop.f32.mrb[76].mxu0 }
0x1307   :  { %v2810_v58 = vpack.c.bf16 %v2803_v11, %v2757_v5  ;;  %v3637_v31 = vpop.f32.mrb[77].mxu0 }
0x1308   :  { %v2806_v12 = vpop.f32.mrb[78].mxu0 }
0x1309   :  { %v3638_v27 = vpop.f32.mrb[79].mxu0  ;;  %2812 = vxpose.xlu0.c.b16.end [2/2] (short) (narrow) %v2810_v58, 16 }
0x136b   :  { %v2819_v35 = vpop.trf.xlu0 }
0x136c   :  { %3644 = vmatmul.mubr.msk.bf16.vlgmr.msra.gmra.mrb[72].mxu1 %vm120_vm1, %v2819_v35 }
0x136d   :  { %3663 = vmatprep.mubr.msk.bf16.mxu1 %vm3942_vm0, %v3941_v0 }
0x143f   :  { %v2864_v60 = vpop.f32.mrb[72].mxu1 }
0x1440   :  { %v2865_v13 = vadd.f32 %v2864_v60, %v4489_v18  ;;  %v3645_v3 = vpop.f32.mrb[73].mxu1  ;;  %v2894_v18 = vpop.xlane.xlu1 %2893 }
0x1441   :  { %v2867_v21 = vpop.f32.mrb[74].mxu1  ;;  %v2898_v34 = vmul.f32 0.03125, %v2894_v18 }
0x1442   :  { %v2879_v17 = vadd.f32 %v2865_v13, %v4325_v23  ;;  %v3646_v16 = vpop.f32.mrb[75].mxu1  ;;  %v3688_v23 = vld [vmem:[%s4612_s7] sm:$0xff]   ;;  %s3944_s7 = smov [#allocation11]  }
0x1443   :  { %3656 = vmatpush3.bf16.msra.mxu1 %v3688_v23  ;;  %v2900_v56 = vadd.f32 1e-06, %v2898_v34  ;;  %s3126_s28 = sshll.u32 %s3944_s7, 4  ;;  %s3127_s28 = int_to_ptr.vmem [resolvable:$true] %s3126_s28 }
0x1444   :  { %v2883_v25 = vsel %vm120_vm1, %v2879_v17, 0.0  ;;  %3657 = vmatprep.subr.bf16.mxu1 %v3941_v0  ;;  %s3857_s15 = scalar_lea.vmem %s3127_s28, 1024  ;;  %p3862_p5 = scmp.lt.s32.totalorder %s3127_s28, %s3127_s28 }
0x1445   :  { %2884 = vadd.xlane.f32.xlu0 %v2883_v25  ;;  %3760 = vrsqrt.f32 %v2900_v56  ;;  %p3858_p4 = scmp.ne.s32.totalorder %s3127_s28, %s3857_s15  ;;  %p3863_p6 = scmp.lt.s32.totalorder %s3857_s15, %s3857_s15 }
0x1447   :  { %3658 = vmatpush3.bf16.msra.mxu1 %v3689_v37  ;;  %p3864_p7 = por %p3863_p6, %p3862_p5 }
0x1448   :  { %3659 = vmatprep.subr.bf16.mxu1 %v3941_v0 }
0x1449   :  { %p3865_p8 = pnand %p3864_p7, %p3858_p4 }
0x144b   :  { %3660 = vmatpush3.bf16.msra.mxu1 %v3690_v47 }
0x144c   :  { %3661 = vmatprep.subr.bf16.mxu1 %v3941_v0  ;;  %v2996_v0 = vsub.s32 3, %v4099_v7 }
0x144e   :  { %v2997_v63 = vrot.slane %v3768_v41, %v2996_v0 }
0x144f   :  { %v3761_v40 = vpop.eup %3760  ;;  %3662 = vmatpush3.bf16.msra.mxu1 %v3691_v51 }
0x1450   :  { %v2904_v43 = vmul.f32 %v3761_v40, %v2888_v59 }
0x1452   :  { %v2910_v22 = vmul.f32 %v2909_v42, %v2904_v43 }
0x1454   :  { %v2916_v2 = vadd.f32 %v2915_v1, %v2910_v22 }
0x14d2   :  { %v2885_v26 = vpop.xlane.xlu0 %2884 }
0x14d3   :  { %v2887_v28 = vmul.f32 0.03125, %v2885_v26 }
0x14d5   :  { %v2889_v52 = vsub.f32 %v2879_v17, %v2887_v28 }
0x14d7   :  { %v2891_v29 = vmul.f32 %v2889_v52, %v2889_v52 }
0x14d9   :  { %v2895_v53 = vsel %vm120_vm1, %v2891_v29, 0.0 }
0x14da   :  { %2896 = vadd.xlane.f32.xlu0 %v2895_v53 }
0x1567   :  { %v2897_v45 = vpop.xlane.xlu0 %2896 }
0x1568   :  { %v2899_v38 = vmul.f32 0.03125, %v2897_v45 }
0x156a   :  { %v2901_v39 = vadd.f32 1e-06, %v2899_v38 }
0x156c   :  { %3762 = vrsqrt.f32 %v2901_v39 }
0x1576   :  { %v3763_v9 = vpop.eup %3762 }
0x1577   :  { %v2905_v48 = vmul.f32 %v3763_v9, %v2889_v52 }
0x1579   :  { %v2911_v49 = vmul.f32 %v2909_v42, %v2905_v48 }
0x157b   :  { %v2917_v50 = vadd.f32 %v2915_v1, %v2911_v49 }
0x157d   :  { %v2918_v46 = vpack.c.bf16 %v2917_v50, %v2916_v2 }
0x157f   :  { %3652 = vmatmul.mubr.msk.bf16.vlgmr.msra.gmra.mrb[80].mxu0 %vm120_vm1, %v2918_v46 }
0x1652   :  { %v2976_v4 = vpop.f32.mrb[80].mxu0 }
0x1653   :  { %v2977_v32 = vadd.f32 %v2976_v4, %v2926_v55  ;;  %v3653_v59 = vpop.f32.mrb[81].mxu0 }
0x1654   :  { %v2979_v33 = vpop.f32.mrb[82].mxu0 }
0x1655   :  { %v2980_v44 = vadd.f32 %v2979_v33, %v2926_v55  ;;  %v3654_v61 = vpop.f32.mrb[83].mxu0  ;;  %v2983_v62 = vmax.f32 %v2977_v32, 0.0 }
0x1657   :  { %v2984_v15 = vmax.f32 %v2980_v44, 0.0 }
0x1659   :  { %v2985_v30 = vpack.c.bf16 %v2984_v15, %v2983_v62 }
0x165b   :  { %3664 = vmatmul.mubr.msk.bf16.vlgmr.msra.gmra.mrb[76].mxu1 %vm3022_vm4, %v2985_v30 }
0x172e   :  { %v3060_v5 = vpop.f32.mrb[76].mxu1 }
0x172f   :  { %v3061_v10 = vadd.f32 %v3060_v5, %v2997_v63  ;;  %v3665_v6 = vpop.f32.mrb[77].mxu1 }
0x1730   :  { %v3063_v57 = vpop.f32.mrb[78].mxu1 }
0x1731   :  { %v3067_v11 = vadd.f32 %v3061_v10, %v2916_v2  ;;  %v3064_v58 = vadd.f32 %v3063_v57, %v2997_v63  ;;  %v3666_v31 = vpop.f32.mrb[79].mxu1 }
0x1733   :  { %v3068_v12 = vadd.f32 %v3064_v58, %v2917_v50  ;;  %v3069_v27 = vsel %vm120_vm1, %v3067_v11, 0.0 }
0x1734   :  { %3070 = vadd.xlane.f32.xlu1 %v3069_v27 }
0x1735   :  { %v3072_v35 = vsel %vm120_vm1, %v3068_v12, 0.0 }
0x1736   :  { %3073 = vadd.xlane.f32.xlu0 %v3072_v35 }
0x17c1   :  { %v3071_v60 = vpop.xlane.xlu1 %3070 }
0x17c2   :  { %v3075_v13 = vmul.f32 0.03125, %v3071_v60 }
0x17c3   :  { %v3074_v3 = vpop.xlane.xlu0 %3073 }
0x17c4   :  { %v3077_v21 = vsub.f32 %v3067_v11, %v3075_v13  ;;  %v3076_v7 = vmul.f32 0.03125, %v3074_v3 }
0x17c6   :  { %v3078_v17 = vsub.f32 %v3068_v12, %v3076_v7  ;;  %v3079_v16 = vmul.f32 %v3077_v21, %v3077_v21 }
0x17c8   :  { %v3081_v25 = vsel %vm120_vm1, %v3079_v16, 0.0  ;;  %v3080_v26 = vmul.f32 %v3078_v17, %v3078_v17 }
0x17c9   :  { %3082 = vadd.xlane.f32.xlu1 %v3081_v25 }
0x17ca   :  { %v3084_v28 = vsel %vm120_vm1, %v3080_v26, 0.0 }
0x17cb   :  { %3085 = vadd.xlane.f32.xlu0 %v3084_v28 }
0x17cc   :  { %3868 = shalt.err (!%p3865_p8)
}
0x17cd   :  { %s3869_s30 = scalar_lea.hbm %s4615_s10, 1024 }
0x17ce   :  { %p3870_p9 = scmp.ne.s32.totalorder %s4615_s10, %s3869_s30  ;;  %p3873_p10 = scmp.lt.u32.totalorder %s3869_s30, %s4615_s10 }
0x17d0   :  { %p3875_p11 = pnand %p3873_p10, %p3870_p9 }
0x17d2   :  { %3878 = shalt.err (!%p3875_p11)
}
0x17d3   :  { %3132 = dma.vmem_to_hbm [thread:$0]  %s3127_s28, 1024, %s4615_s10, [#allocation12], %s3939_s6, %s3939_s6, %s3940_s27  }
0x17d4   :  { %s3945_s4 = smov [#allocation13]  }
0x17d5   :  { %s3138_s13 = sshll.u32 %s3945_s4, 4  ;;  %s3139_s13 = int_to_ptr.vmem [resolvable:$true] %s3138_s13 }
0x17d6   :  { %s3879_s19 = scalar_lea.vmem %s3139_s13, 1024  ;;  %p3884_p13 = scmp.lt.s32.totalorder %s3139_s13, %s3139_s13 }
0x17d7   :  { %p3880_p12 = scmp.ne.s32.totalorder %s3139_s13, %s3879_s19  ;;  %p3885_p0 = scmp.lt.s32.totalorder %s3879_s19, %s3879_s19 }
0x17d9   :  { %p3886_p1 = por %p3885_p0, %p3884_p13 }
0x17db   :  { %p3887_p2 = pnand %p3886_p1, %p3880_p12 }
0x17dd   :  { %3890 = shalt.err (!%p3887_p2)
}
0x17de   :  { %s3891_s21 = scalar_lea.hbm %s4616_s11, 1024 }
0x17df   :  { %p3892_p3 = scmp.ne.s32.totalorder %s4616_s11, %s3891_s21  ;;  %p3895_p4 = scmp.lt.u32.totalorder %s3891_s21, %s4616_s11 }
0x17e1   :  { %p3897_p5 = pnand %p3895_p4, %p3892_p3 }
0x17e3   :  { %3900 = shalt.err (!%p3897_p5)
}
0x17e4   :  { %3144 = dma.vmem_to_hbm [thread:$0]  %s3139_s13, 1024, %s4616_s11, [#allocation12], %s3939_s6, %s3939_s6, %s3940_s27   ;;  %v92_v37 = vld [vmem:[#allocation8 + $0x8] sm:$0x3] }
0x17e5   :  { %v3098_v18 = vrot.slane %v92_v37, %v4102_v8  ;;  %v3104_v45 = vrot.slane %v92_v37, %v4333_v19  ;;  %s3946_s24 = smov [#allocation10]  }
0x17e6   :  { %s3114_s11 = sshll.u32 %s3946_s24, 4  ;;  %s3115_s11 = int_to_ptr.vmem [resolvable:$true] %s3114_s11 }
0x17e7   :  { %s3901_s25 = scalar_lea.vmem %s3115_s11, 256  ;;  %p3906_p7 = scmp.lt.s32.totalorder %s3115_s11, %s3115_s11 }
0x17e8   :  { %p3902_p6 = scmp.ne.s32.totalorder %s3115_s11, %s3901_s25  ;;  %p3907_p8 = scmp.lt.s32.totalorder %s3901_s25, %s3901_s25 }
0x17ea   :  { %p3908_p9 = por %p3907_p8, %p3906_p7 }
0x17ec   :  { %p3909_p10 = pnand %p3908_p9, %p3902_p6 }
0x1856   :  { %v3083_v52 = vpop.xlane.xlu1 %3082 }
0x1857   :  { %v3087_v29 = vmul.f32 0.03125, %v3083_v52 }
0x1858   :  { %v3086_v53 = vpop.xlane.xlu0 %3085 }
0x1859   :  { %v3089_v54 = vadd.f32 1e-06, %v3087_v29  ;;  %v3088_v36 = vmul.f32 0.03125, %v3086_v53 }
0x185b   :  { %3764 = vrsqrt.f32 %v3089_v54  ;;  %v3090_v23 = vadd.f32 1e-06, %v3088_v36 }
0x185d   :  { %3766 = vrsqrt.f32 %v3090_v23 }
0x1865   :  { %v3765_v34 = vpop.eup %3764 }
0x1866   :  { %v3093_v56 = vmul.f32 %v3765_v34, %v3077_v21 }
0x1867   :  { %v3767_v38 = vpop.eup %3766 }
0x1868   :  { %v3094_v39 = vmul.f32 %v3767_v38, %v3078_v17  ;;  %v3099_v24 = vmul.f32 %v3098_v18, %v3093_v56 }
0x186a   :  { %v3100_v40 = vmul.f32 %v3098_v18, %v3094_v39  ;;  %v3105_v41 = vadd.f32 %v3104_v45, %v3099_v24 }
0x186c   :  { %v3106_v42 = vadd.f32 %v3104_v45, %v3100_v40  ;;  %3107 = vst.msk [vmem:[#allocation10] sm:$0xff] %vm120_vm1, %v3105_v41 }
0x186e   :  { %3108 = vst.msk [vmem:[#allocation10 + $0x8] sm:$0xff] %vm120_vm1, %v3106_v42 }
0x186f   :  { %3912 = shalt.err (!%p3909_p10)
}
0x1870   :  { %s3913_s28 = scalar_lea.hbm %s4614_s9, 256 }
0x1871   :  { %p3914_p11 = scmp.ne.s32.totalorder %s4614_s9, %s3913_s28  ;;  %p3917_p12 = scmp.lt.u32.totalorder %s3913_s28, %s4614_s9 }
0x1873   :  { %p3919_p13 = pnand %p3917_p12, %p3914_p11 }
0x1875   :  { %3922 = shalt.err (!%p3919_p13)
}
0x1876   :  { %3120 = dma.vmem_to_hbm [thread:$0]  %s3115_s11, 256, %s4614_s9, [#allocation4], %s3939_s6, %s3939_s6, %s3940_s27  }
0x1877   :  { %3929 = dma.done.wait [#allocation4], 256  }
0x1878   :  { %3930 = vsyncadd [#allocation4], 4294967040 }
0x1879   :  { %3931 = dma.done.wait [#allocation12], 2048  }
0x187a   :  { %3932 = vsyncadd [#allocation12], 4294965248 }
0x187b   :  { %3154 = vsyncpa [#allocation3], 1 }
0x187c   :  { %3155 = vsyncpa [#allocation6], 1 }
0x187d   :  { %3156 = vsyncpa [#allocation9], 1 }
0x187e   :  { %3157 = vsyncpa [#allocation4], 1 }
0x187f   :  { %3158 = vsyncpa [#allocation12], 1 }

</bundles_post_ra>
